<compile_context>
chip_gen: v5e
topology: v5e:2x2
jax: 0.10.0
libtpu: 0.0.40
codegen_flags: <defaults>
</compile_context>

<pallas_src>
import functools

import jax
import jax.numpy as jnp
import numpy as np
from jax.experimental import pallas as pl
from jax.experimental.pallas import tpu as pltpu

EPS = 1e-5  # PyTorch BatchNorm2d default


# ---------------------------------------------------------------------------
# In-kernel helpers (plain Python, traced inside each kernel body).
# ---------------------------------------------------------------------------
def _build_padded(x_ref, xpf_ref, *, HW, OFF):
    """Zero-fill the flat scratch and place the image rows at lane offset OFF."""
    xpf_ref[...] = jnp.zeros(xpf_ref.shape, xpf_ref.dtype)
    xpf_ref[:, OFF:OFF + HW] = x_ref[0].astype(jnp.float32)


def _depthwise_flat(xpf_ref, w_ref, *, H, W, KH, KW, pad, OFF):
    """Depthwise conv on the flattened-spatial layout.  Returns (C, H*W) f32.

    Vertical padding is handled by the zero rows in the scratch buffer; horizontal
    padding by a per-kw lane mask (the shifted slice wraps into the neighbouring
    row there, so those lanes are zeroed).
    """
    C = xpf_ref.shape[0]
    HW = H * W
    col = jax.lax.broadcasted_iota(jnp.int32, (1, HW), 1) % W   # w coordinate per lane
    acc = jnp.zeros((C, HW), jnp.float32)
    for kw in range(KW):
        valid = jnp.logical_and(col >= (pad - kw), col < (W + pad - kw))
        mask = valid.astype(jnp.float32)                        # (1, HW)
        inner = jnp.zeros((C, HW), jnp.float32)
        for kh in range(KH):
            off = OFF + (kh - pad) * W + (kw - pad)             # static lane shift
            tap = xpf_ref[:, off:off + HW].astype(jnp.float32)  # (C, HW)
            wgt = w_ref[:, kh * KW + kw: kh * KW + kw + 1]      # (C, 1) per-channel tap
            inner = inner + tap * wgt
        acc = acc + inner * mask
    return acc


def _pointwise(a, pw_ref):
    """1x1 conv as VPU broadcast-FMAs: (C, HW) x (Cout, C) -> (Cout, HW)."""
    C, HW = a.shape
    Cout = pw_ref.shape[0]
    z = jnp.zeros((Cout, HW), jnp.float32)
    for c in range(C):
        z = z + pw_ref[:, c:c + 1] * a[c:c + 1, :]              # outer-product FMA
    return z


# ---------------------------------------------------------------------------
# Pass 1: depthwise conv -> per-channel partial (sum, sum_sq) for BN1.
# ---------------------------------------------------------------------------
def _dw_stats_kernel(x_ref, w_ref, stats_ref, xpf_ref, *, H, W, KH, KW, pad, OFF):
    HW = H * W
    _build_padded(x_ref, xpf_ref, HW=HW, OFF=OFF)
    dw = _depthwise_flat(xpf_ref, w_ref, H=H, W=W, KH=KH, KW=KW, pad=pad, OFF=OFF)
    stats_ref[0, :, 0:1] = jnp.sum(dw, axis=1, keepdims=True)
    stats_ref[0, :, 1:2] = jnp.sum(dw * dw, axis=1, keepdims=True)


# ---------------------------------------------------------------------------
# Pass 2: depthwise + BN1 + ReLU + pointwise -> partial (sum, sum_sq) for BN2.
# ---------------------------------------------------------------------------
def _dw_bn_pw_stats_kernel(x_ref, w_ref, s1_ref, b1_ref, pw_ref, stats_ref, xpf_ref,
                           *, H, W, KH, KW, pad, OFF):
    HW = H * W
    _build_padded(x_ref, xpf_ref, HW=HW, OFF=OFF)
    dw = _depthwise_flat(xpf_ref, w_ref, H=H, W=W, KH=KH, KW=KW, pad=pad, OFF=OFF)
    a = jnp.maximum(dw * s1_ref[...] + b1_ref[...], 0.0)       # BN1 + ReLU
    z = _pointwise(a, pw_ref)                                  # 1x1 conv (VPU)
    stats_ref[0, :, 0:1] = jnp.sum(z, axis=1, keepdims=True)
    stats_ref[0, :, 1:2] = jnp.sum(z * z, axis=1, keepdims=True)


# ---------------------------------------------------------------------------
# Pass 3: full fused forward, lane-dense (Cout, H*W) output store.
# ---------------------------------------------------------------------------
def _dw_bn_pw_bn_kernel(x_ref, w_ref, s1_ref, b1_ref, pw_ref, s2_ref, b2_ref,
                        o_ref, xpf_ref, *, H, W, KH, KW, pad, OFF):
    HW = H * W
    _build_padded(x_ref, xpf_ref, HW=HW, OFF=OFF)
    dw = _depthwise_flat(xpf_ref, w_ref, H=H, W=W, KH=KH, KW=KW, pad=pad, OFF=OFF)
    a = jnp.maximum(dw * s1_ref[...] + b1_ref[...], 0.0)       # BN1 + ReLU
    z = _pointwise(a, pw_ref)                                  # 1x1 conv (VPU)
    o_ref[0] = jnp.maximum(z * s2_ref[...] + b2_ref[...], 0.0).astype(o_ref.dtype)


# ---------------------------------------------------------------------------
# Tiny glue: finish BN affine params from per-step partial sums (O(C) work).
# ---------------------------------------------------------------------------
def _finish_bn(partials, gamma, beta, count):
    sums = jnp.sum(partials, axis=0)                            # (C, 2): [sum, sum_sq]
    mean = sums[:, 0] / count
    var = jnp.maximum(sums[:, 1] / count - mean * mean, 0.0)    # biased batch variance
    inv = gamma * jax.lax.rsqrt(var + EPS)
    return inv.reshape(-1, 1), (beta - mean * inv).reshape(-1, 1)


# ---------------------------------------------------------------------------
# Public wrapper (NCHW in, NCHW out — no transposes, reshapes are free views).
# ---------------------------------------------------------------------------
def depthwise_conv2d_bn(x_nchw, params, *, stride=1, padding=0):
    dw_w = params["dw_w"]          # (C, KH, KW)   depthwise weights
    pw_w = params["pw_w"]          # (Cout, C)     pointwise 1x1 weights (PyTorch OI)
    gamma1, beta1 = params["gamma1"], params["beta1"]
    gamma2, beta2 = params["gamma2"], params["beta2"]

    N, C, H, W = x_nchw.shape
    _, KH, KW = dw_w.shape
    Cout = pw_w.shape[0]

    if stride != 1 or KH != KW or 2 * padding != KH - 1:
        # TODO(synk): general stride / non-"same" padding needs a strided (Wo != W)
        # output layout; only the common 3x3 / stride 1 / pad (K-1)/2 config is fused.
        raise NotImplementedError("fused kernel supports stride=1 'same' depthwise conv")

    HW = H * W
    # Flat padded scratch layout: [OFF zeros | H*W image | pad*W+pad zeros].
    # OFF rounded to a lane-aligned offset (>= pad*W + pad so tap slices stay in-bounds).
    OFF = ((padding * W + padding + 127) // 128) * 128
    LB = OFF + HW + padding * W + padding

    x_flat = x_nchw.reshape(N, C, HW).astype(jnp.float32)       # free contiguous reshape
    w_flat = dw_w.reshape(C, KH * KW).astype(jnp.float32)
    pw = pw_w.astype(jnp.float32)

    kargs = dict(H=H, W=W, KH=KH, KW=KW, pad=padding, OFF=OFF)
    cparams = pltpu.CompilerParams(dimension_semantics=("parallel",))
    scratch = [pltpu.VMEM((C, LB), jnp.float32)]

    x_spec = pl.BlockSpec((1, C, HW), lambda n: (n, 0, 0))
    w_spec = pl.BlockSpec((C, KH * KW), lambda n: (0, 0))
    pw_spec = pl.BlockSpec((Cout, C), lambda n: (0, 0))
    cvec = lambda d: pl.BlockSpec((d, 1), lambda n: (0, 0))

    # --- pass 1: depthwise conv -> BN1 partial stats ---
    stats1 = pl.pallas_call(
        functools.partial(_dw_stats_kernel, **kargs),
        out_shape=jax.ShapeDtypeStruct((N, C, 2), jnp.float32),
        grid=(N,),
        in_specs=[x_spec, w_spec],
        out_specs=pl.BlockSpec((1, C, 2), lambda n: (n, 0, 0)),
        scratch_shapes=scratch,
        compiler_params=cparams,
    )(x_flat, w_flat)
    scale1, shift1 = _finish_bn(stats1, gamma1, beta1, N * HW)

    # --- pass 2: depthwise + BN1 + ReLU + pointwise -> BN2 partial stats ---
    stats2 = pl.pallas_call(
        functools.partial(_dw_bn_pw_stats_kernel, **kargs),
        out_shape=jax.ShapeDtypeStruct((N, Cout, 2), jnp.float32),
        grid=(N,),
        in_specs=[x_spec, w_spec, cvec(C), cvec(C), pw_spec],
        out_specs=pl.BlockSpec((1, Cout, 2), lambda n: (n, 0, 0)),
        scratch_shapes=scratch,
        compiler_params=cparams,
    )(x_flat, w_flat, scale1, shift1, pw)
    scale2, shift2 = _finish_bn(stats2, gamma2, beta2, N * HW)

    # --- pass 3: fully fused forward, writes the only activation-sized HBM tensor ---
    out_flat = pl.pallas_call(
        functools.partial(_dw_bn_pw_bn_kernel, **kargs),
        out_shape=jax.ShapeDtypeStruct((N, Cout, HW), jnp.float32),
        grid=(N,),
        in_specs=[x_spec, w_spec, cvec(C), cvec(C), pw_spec, cvec(Cout), cvec(Cout)],
        out_specs=pl.BlockSpec((1, Cout, HW), lambda n: (n, 0, 0)),
        scratch_shapes=scratch,
        compiler_params=cparams,
    )(x_flat, w_flat, scale1, shift1, pw, scale2, shift2)

    return out_flat.reshape(N, Cout, H, W)                      # free reshape, NCHW


# ---------------------------------------------------------------------------
# Pure-JAX reference (mirrors PyTorch forward in train mode, bias=False).
# ---------------------------------------------------------------------------
def ref_forward(x_nchw, params, *, stride=1, padding=0):
    dw_w = params["dw_w"]            # (C, KH, KW)
    pw_w = params["pw_w"]            # (Cout, C)
    C = dw_w.shape[0]

    y = jax.lax.conv_general_dilated(
        x_nchw, dw_w[:, None, :, :], (stride, stride),
        [(padding, padding), (padding, padding)],
        dimension_numbers=("NCHW", "OIHW", "NCHW"), feature_group_count=C)

    def bn_relu(t, gamma, beta):
        mean = t.mean(axis=(0, 2, 3), keepdims=True)
        var = t.var(axis=(0, 2, 3), keepdims=True)               # biased variance
        t = (t - mean) / jnp.sqrt(var + EPS)
        t = t * gamma[None, :, None, None] + beta[None, :, None, None]
        return jnp.maximum(t, 0.0)

    y = bn_relu(y, params["gamma1"], params["beta1"])
    z = jax.lax.conv_general_dilated(
        y, pw_w[:, :, None, None], (1, 1), [(0, 0), (0, 0)],
        dimension_numbers=("NCHW", "OIHW", "NCHW"))
    return bn_relu(z, params["gamma2"], params["beta2"])


if __name__ == "__main__":
    # Module config: in_channels=4, out_channels=8, kernel_size=3, stride=1, padding=1
    N, Cin, H, W = 2, 4, 16, 16
    Cout, K, stride, padding = 8, 3, 1, 1

    key = jax.random.PRNGKey(0)
    k1, k2, k3, k4, k5, k6, kx = jax.random.split(key, 7)
    params = {
        "dw_w": jax.random.normal(k1, (Cin, K, K), jnp.float32) * 0.2,
        "pw_w": jax.random.normal(k2, (Cout, Cin), jnp.float32) * 0.2,
        "gamma1": 1.0 + 0.1 * jax.random.normal(k3, (Cin,), jnp.float32),
        "beta1": 0.1 * jax.random.normal(k4, (Cin,), jnp.float32),
        "gamma2": 1.0 + 0.1 * jax.random.normal(k5, (Cout,), jnp.float32),
        "beta2": 0.1 * jax.random.normal(k6, (Cout,), jnp.float32),
    }
    x = jax.random.normal(kx, (N, Cin, H, W), jnp.float32)

    fwd = jax.jit(functools.partial(depthwise_conv2d_bn, stride=stride, padding=padding))
    out = jax.block_until_ready(fwd(x, params))

    ref = jax.block_until_ready(ref_forward(x, params, stride=stride, padding=padding))
    assert out.shape == (N, Cout, H, W), out.shape
    np.testing.assert_allclose(np.asarray(out), np.asarray(ref), rtol=1e-4, atol=1e-4)
    print("KERNEL_OK")
</pallas_src>

<mosaic_0001>
module attributes {stable_mosaic.version = 11 : i64} {
  func.func @_dw_bn_pw_stats_kernel(%arg0: i32, %arg1: memref<1x4x256xf32, #tpu.memory_space<vmem>>, %arg2: memref<4x9xf32, #tpu.memory_space<vmem>>, %arg3: memref<4x1xf32, #tpu.memory_space<vmem>>, %arg4: memref<4x1xf32, #tpu.memory_space<vmem>>, %arg5: memref<8x4xf32, #tpu.memory_space<vmem>>, %arg6: memref<1x8x2xf32, #tpu.memory_space<vmem>>, %arg7: memref<4x401xf32, #tpu.memory_space<vmem>>) attributes {dimension_semantics = [#tpu.dimension_semantics<parallel>], iteration_bounds = array<i64: 2>, scalar_prefetch = 0 : i64, scratch_operands = 1 : i64, tpu.core_type = #tpu.core_type<tc>, window_params = [{transform_indices = @transform_0, window_bounds = array<i64: 1, 4, 256>}, {pipeline_mode = #tpu.pipeline_mode<synchronous>, transform_indices = @transform_1, window_bounds = array<i64: 4, 9>}, {pipeline_mode = #tpu.pipeline_mode<synchronous>, transform_indices = @transform_2, window_bounds = array<i64: 4, 1>}, {pipeline_mode = #tpu.pipeline_mode<synchronous>, transform_indices = @transform_3, window_bounds = array<i64: 4, 1>}, {pipeline_mode = #tpu.pipeline_mode<synchronous>, transform_indices = @transform_4, window_bounds = array<i64: 8, 4>}, {transform_indices = @transform_5, window_bounds = array<i64: 1, 8, 2>}]} {
    %cst = arith.constant 0.000000e+00 : f32
    %0 = vector.broadcast %cst : f32 to vector<4x401xf32>
    %c0 = arith.constant 0 : index
    %c0_0 = arith.constant 0 : index
    %1 = vector.load %arg7[%c0, %c0_0] : memref<4x401xf32, #tpu.memory_space<vmem>>, vector<4x401xf32>
    tpu.vector_store %arg7[%c0, %c0_0], %0 {strides = array<i32>} : memref<4x401xf32, #tpu.memory_space<vmem>>, vector<4x401xf32>,
    %c0_1 = arith.constant 0 : index
    %c0_2 = arith.constant 0 : index
    %c0_3 = arith.constant 0 : index
    %2 = vector.load %arg1[%c0_1, %c0_2, %c0_3] : memref<1x4x256xf32, #tpu.memory_space<vmem>>, vector<1x4x256xf32>
    %3 = vector.shape_cast %2 : vector<1x4x256xf32> to vector<4x256xf32>
    %c0_4 = arith.constant 0 : index
    %c128 = arith.constant 128 : index
    %4 = vector.load %arg7[%c0_4, %c128] : memref<4x401xf32, #tpu.memory_space<vmem>>, vector<4x256xf32>
    tpu.vector_store %arg7[%c0_4, %c128], %3 {strides = array<i32>} : memref<4x401xf32, #tpu.memory_space<vmem>>, vector<4x256xf32>,
    %5 = tpu.iota {dimensions = array<i32: 1>} : vector<1x256xi32>
    %c16_i32 = arith.constant 16 : i32
    %c0_i32 = arith.constant 0 : i32
    %6 = arith.cmpi eq, %c16_i32, %c0_i32 : i32
    %c1_i32 = arith.constant 1 : i32
    %7 = arith.select %6, %c1_i32, %c16_i32 : i32
    %8 = vector.broadcast %7 : i32 to vector<1x256xi32>
    %9 = arith.remsi %5, %8 : vector<1x256xi32>
    %c0_i32_5 = arith.constant 0 : i32
    %10 = vector.broadcast %c0_i32_5 : i32 to vector<1x256xi32>
    %11 = arith.cmpi ne, %9, %10 : vector<1x256xi32>
    %c0_i32_6 = arith.constant 0 : i32
    %12 = vector.broadcast %c0_i32_6 : i32 to vector<1x256xi32>
    %13 = arith.cmpi slt, %9, %12 : vector<1x256xi32>
    %c0_i32_7 = arith.constant 0 : i32
    %14 = arith.cmpi slt, %7, %c0_i32_7 : i32
    %15 = vector.broadcast %14 : i1 to vector<1x256xi1>
    %16 = vector.broadcast %15 : vector<1x256xi1> to vector<1x256xi1>
    %17 = arith.xori %13, %16 : vector<1x256xi1>
    %18 = arith.andi %17, %11 : vector<1x256xi1>
    %19 = vector.broadcast %7 : i32 to vector<1x256xi32>
    %20 = arith.addi %9, %19 : vector<1x256xi32>
    %21 = arith.select %18, %20, %9 : vector<1x256xi1>, vector<1x256xi32>
    %cst_8 = arith.constant 0.000000e+00 : f32
    %22 = vector.broadcast %cst_8 : f32 to vector<4x256xf32>
    %c1_i32_9 = arith.constant 1 : i32
    %23 = vector.broadcast %c1_i32_9 : i32 to vector<1x256xi32>
    %24 = arith.cmpi sge, %21, %23 : vector<1x256xi32>
    %c17_i32 = arith.constant 17 : i32
    %25 = vector.broadcast %c17_i32 : i32 to vector<1x256xi32>
    %26 = arith.cmpi slt, %21, %25 : vector<1x256xi32>
    %27 = arith.andi %24, %26 : vector<1x256xi1>
    %28 = arith.extui %27 : vector<1x256xi1> to vector<1x256xi32>
    %29 = arith.sitofp %28 : vector<1x256xi32> to vector<1x256xf32>
    %cst_10 = arith.constant 0.000000e+00 : f32
    %30 = vector.broadcast %cst_10 : f32 to vector<4x256xf32>
    %c0_11 = arith.constant 0 : index
    %c111 = arith.constant 111 : index
    %31 = vector.load %arg7[%c0_11, %c111] : memref<4x401xf32, #tpu.memory_space<vmem>>, vector<4x256xf32>
    %c0_12 = arith.constant 0 : index
    %c0_13 = arith.constant 0 : index
    %32 = vector.load %arg2[%c0_12, %c0_13] : memref<4x9xf32, #tpu.memory_space<vmem>>, vector<4x1xf32>
    %33 = vector.broadcast %32 : vector<4x1xf32> to vector<4x256xf32>
    %34 = arith.mulf %31, %33 : vector<4x256xf32>
    %35 = arith.addf %30, %34 : vector<4x256xf32>
    %c0_14 = arith.constant 0 : index
    %c127 = arith.constant 127 : index
    %36 = vector.load %arg7[%c0_14, %c127] : memref<4x401xf32, #tpu.memory_space<vmem>>, vector<4x256xf32>
    %c0_15 = arith.constant 0 : index
    %c3 = arith.constant 3 : index
    %37 = vector.load %arg2[%c0_15, %c3] : memref<4x9xf32, #tpu.memory_space<vmem>>, vector<4x1xf32>
    %38 = vector.broadcast %37 : vector<4x1xf32> to vector<4x256xf32>
    %39 = arith.mulf %36, %38 : vector<4x256xf32>
    %40 = arith.addf %35, %39 : vector<4x256xf32>
    %c0_16 = arith.constant 0 : index
    %c143 = arith.constant 143 : index
    %41 = vector.load %arg7[%c0_16, %c143] : memref<4x401xf32, #tpu.memory_space<vmem>>, vector<4x256xf32>
    %c0_17 = arith.constant 0 : index
    %c6 = arith.constant 6 : index
    %42 = vector.load %arg2[%c0_17, %c6] : memref<4x9xf32, #tpu.memory_space<vmem>>, vector<4x1xf32>
    %43 = vector.broadcast %42 : vector<4x1xf32> to vector<4x256xf32>
    %44 = arith.mulf %41, %43 : vector<4x256xf32>
    %45 = arith.addf %40, %44 : vector<4x256xf32>
    %46 = vector.broadcast %29 : vector<1x256xf32> to vector<4x256xf32>
    %47 = arith.mulf %45, %46 : vector<4x256xf32>
    %48 = arith.addf %22, %47 : vector<4x256xf32>
    %c0_i32_18 = arith.constant 0 : i32
    %49 = vector.broadcast %c0_i32_18 : i32 to vector<1x256xi32>
    %50 = arith.cmpi sge, %21, %49 : vector<1x256xi32>
    %c16_i32_19 = arith.constant 16 : i32
    %51 = vector.broadcast %c16_i32_19 : i32 to vector<1x256xi32>
    %52 = arith.cmpi slt, %21, %51 : vector<1x256xi32>
    %53 = arith.andi %50, %52 : vector<1x256xi1>
    %54 = arith.extui %53 : vector<1x256xi1> to vector<1x256xi32>
    %55 = arith.sitofp %54 : vector<1x256xi32> to vector<1x256xf32>
    %cst_20 = arith.constant 0.000000e+00 : f32
    %56 = vector.broadcast %cst_20 : f32 to vector<4x256xf32>
    %c0_21 = arith.constant 0 : index
    %c112 = arith.constant 112 : index
    %57 = vector.load %arg7[%c0_21, %c112] : memref<4x401xf32, #tpu.memory_space<vmem>>, vector<4x256xf32>
    %c0_22 = arith.constant 0 : index
    %c1 = arith.constant 1 : index
    %58 = vector.load %arg2[%c0_22, %c1] : memref<4x9xf32, #tpu.memory_space<vmem>>, vector<4x1xf32>
    %59 = vector.broadcast %58 : vector<4x1xf32> to vector<4x256xf32>
    %60 = arith.mulf %57, %59 : vector<4x256xf32>
    %61 = arith.addf %56, %60 : vector<4x256xf32>
    %c0_23 = arith.constant 0 : index
    %c128_24 = arith.constant 128 : index
    %62 = vector.load %arg7[%c0_23, %c128_24] : memref<4x401xf32, #tpu.memory_space<vmem>>, vector<4x256xf32>
    %c0_25 = arith.constant 0 : index
    %c4 = arith.constant 4 : index
    %63 = vector.load %arg2[%c0_25, %c4] : memref<4x9xf32, #tpu.memory_space<vmem>>, vector<4x1xf32>
    %64 = vector.broadcast %63 : vector<4x1xf32> to vector<4x256xf32>
    %65 = arith.mulf %62, %64 : vector<4x256xf32>
    %66 = arith.addf %61, %65 : vector<4x256xf32>
    %c0_26 = arith.constant 0 : index
    %c144 = arith.constant 144 : index
    %67 = vector.load %arg7[%c0_26, %c144] : memref<4x401xf32, #tpu.memory_space<vmem>>, vector<4x256xf32>
    %c0_27 = arith.constant 0 : index
    %c7 = arith.constant 7 : index
    %68 = vector.load %arg2[%c0_27, %c7] : memref<4x9xf32, #tpu.memory_space<vmem>>, vector<4x1xf32>
    %69 = vector.broadcast %68 : vector<4x1xf32> to vector<4x256xf32>
    %70 = arith.mulf %67, %69 : vector<4x256xf32>
    %71 = arith.addf %66, %70 : vector<4x256xf32>
    %72 = vector.broadcast %55 : vector<1x256xf32> to vector<4x256xf32>
    %73 = arith.mulf %71, %72 : vector<4x256xf32>
    %74 = arith.addf %48, %73 : vector<4x256xf32>
    %c-1_i32 = arith.constant -1 : i32
    %75 = vector.broadcast %c-1_i32 : i32 to vector<1x256xi32>
    %76 = arith.cmpi sge, %21, %75 : vector<1x256xi32>
    %c15_i32 = arith.constant 15 : i32
    %77 = vector.broadcast %c15_i32 : i32 to vector<1x256xi32>
    %78 = arith.cmpi slt, %21, %77 : vector<1x256xi32>
    %79 = arith.andi %76, %78 : vector<1x256xi1>
    %80 = arith.extui %79 : vector<1x256xi1> to vector<1x256xi32>
    %81 = arith.sitofp %80 : vector<1x256xi32> to vector<1x256xf32>
    %cst_28 = arith.constant 0.000000e+00 : f32
    %82 = vector.broadcast %cst_28 : f32 to vector<4x256xf32>
    %c0_29 = arith.constant 0 : index
    %c113 = arith.constant 113 : index
    %83 = vector.load %arg7[%c0_29, %c113] : memref<4x401xf32, #tpu.memory_space<vmem>>, vector<4x256xf32>
    %c0_30 = arith.constant 0 : index
    %c2 = arith.constant 2 : index
    %84 = vector.load %arg2[%c0_30, %c2] : memref<4x9xf32, #tpu.memory_space<vmem>>, vector<4x1xf32>
    %85 = vector.broadcast %84 : vector<4x1xf32> to vector<4x256xf32>
    %86 = arith.mulf %83, %85 : vector<4x256xf32>
    %87 = arith.addf %82, %86 : vector<4x256xf32>
    %c0_31 = arith.constant 0 : index
    %c129 = arith.constant 129 : index
    %88 = vector.load %arg7[%c0_31, %c129] : memref<4x401xf32, #tpu.memory_space<vmem>>, vector<4x256xf32>
    %c0_32 = arith.constant 0 : index
    %c5 = arith.constant 5 : index
    %89 = vector.load %arg2[%c0_32, %c5] : memref<4x9xf32, #tpu.memory_space<vmem>>, vector<4x1xf32>
    %90 = vector.broadcast %89 : vector<4x1xf32> to vector<4x256xf32>
    %91 = arith.mulf %88, %90 : vector<4x256xf32>
    %92 = arith.addf %87, %91 : vector<4x256xf32>
    %c0_33 = arith.constant 0 : index
    %c145 = arith.constant 145 : index
    %93 = vector.load %arg7[%c0_33, %c145] : memref<4x401xf32, #tpu.memory_space<vmem>>, vector<4x256xf32>
    %c0_34 = arith.constant 0 : index
    %c8 = arith.constant 8 : index
    %94 = vector.load %arg2[%c0_34, %c8] : memref<4x9xf32, #tpu.memory_space<vmem>>, vector<4x1xf32>
    %95 = vector.broadcast %94 : vector<4x1xf32> to vector<4x256xf32>
    %96 = arith.mulf %93, %95 : vector<4x256xf32>
    %97 = arith.addf %92, %96 : vector<4x256xf32>
    %98 = vector.broadcast %81 : vector<1x256xf32> to vector<4x256xf32>
    %99 = arith.mulf %97, %98 : vector<4x256xf32>
    %100 = arith.addf %74, %99 : vector<4x256xf32>
    %c0_35 = arith.constant 0 : index
    %c0_36 = arith.constant 0 : index
    %101 = vector.load %arg3[%c0_35, %c0_36] : memref<4x1xf32, #tpu.memory_space<vmem>>, vector<4x1xf32>
    %102 = vector.broadcast %101 : vector<4x1xf32> to vector<4x256xf32>
    %103 = arith.mulf %100, %102 : vector<4x256xf32>
    %c0_37 = arith.constant 0 : index
    %c0_38 = arith.constant 0 : index
    %104 = vector.load %arg4[%c0_37, %c0_38] : memref<4x1xf32, #tpu.memory_space<vmem>>, vector<4x1xf32>
    %105 = vector.broadcast %104 : vector<4x1xf32> to vector<4x256xf32>
    %106 = arith.addf %103, %105 : vector<4x256xf32>
    %cst_39 = arith.constant 0.000000e+00 : f32
    %107 = vector.broadcast %cst_39 : f32 to vector<4x256xf32>
    %108 = arith.maximumf %106, %107 : vector<4x256xf32>
    %cst_40 = arith.constant 0.000000e+00 : f32
    %109 = vector.broadcast %cst_40 : f32 to vector<8x256xf32>
    %c0_41 = arith.constant 0 : index
    %c0_42 = arith.constant 0 : index
    %110 = vector.load %arg5[%c0_41, %c0_42] : memref<8x4xf32, #tpu.memory_space<vmem>>, vector<8x1xf32>
    %111 = vector.extract_strided_slice %108 {offsets = [0, 0], sizes = [1, 256], strides = [1, 1]} : vector<4x256xf32> to vector<1x256xf32>
    %112 = vector.broadcast %110 : vector<8x1xf32> to vector<8x256xf32>
    %113 = vector.broadcast %111 : vector<1x256xf32> to vector<8x256xf32>
    %114 = arith.mulf %112, %113 : vector<8x256xf32>
    %115 = arith.addf %109, %114 : vector<8x256xf32>
    %c0_43 = arith.constant 0 : index
    %c1_44 = arith.constant 1 : index
    %116 = vector.load %arg5[%c0_43, %c1_44] : memref<8x4xf32, #tpu.memory_space<vmem>>, vector<8x1xf32>
    %117 = vector.extract_strided_slice %108 {offsets = [1, 0], sizes = [1, 256], strides = [1, 1]} : vector<4x256xf32> to vector<1x256xf32>
    %118 = vector.broadcast %116 : vector<8x1xf32> to vector<8x256xf32>
    %119 = vector.broadcast %117 : vector<1x256xf32> to vector<8x256xf32>
    %120 = arith.mulf %118, %119 : vector<8x256xf32>
    %121 = arith.addf %115, %120 : vector<8x256xf32>
    %c0_45 = arith.constant 0 : index
    %c2_46 = arith.constant 2 : index
    %122 = vector.load %arg5[%c0_45, %c2_46] : memref<8x4xf32, #tpu.memory_space<vmem>>, vector<8x1xf32>
    %123 = vector.extract_strided_slice %108 {offsets = [2, 0], sizes = [1, 256], strides = [1, 1]} : vector<4x256xf32> to vector<1x256xf32>
    %124 = vector.broadcast %122 : vector<8x1xf32> to vector<8x256xf32>
    %125 = vector.broadcast %123 : vector<1x256xf32> to vector<8x256xf32>
    %126 = arith.mulf %124, %125 : vector<8x256xf32>
    %127 = arith.addf %121, %126 : vector<8x256xf32>
    %c0_47 = arith.constant 0 : index
    %c3_48 = arith.constant 3 : index
    %128 = vector.load %arg5[%c0_47, %c3_48] : memref<8x4xf32, #tpu.memory_space<vmem>>, vector<8x1xf32>
    %129 = vector.extract_strided_slice %108 {offsets = [3, 0], sizes = [1, 256], strides = [1, 1]} : vector<4x256xf32> to vector<1x256xf32>
    %130 = vector.broadcast %128 : vector<8x1xf32> to vector<8x256xf32>
    %131 = vector.broadcast %129 : vector<1x256xf32> to vector<8x256xf32>
    %132 = arith.mulf %130, %131 : vector<8x256xf32>
    %133 = arith.addf %127, %132 : vector<8x256xf32>
    %cst_49 = arith.constant dense<0.000000e+00> : vector<8xf32>
    %134 = vector.multi_reduction <add>, %133, %cst_49 [1] : vector<8x256xf32> to vector<8xf32>
    %135 = vector.shape_cast %134 : vector<8xf32> to vector<8x1xf32>
    %c0_50 = arith.constant 0 : index
    %c0_51 = arith.constant 0 : index
    %c0_52 = arith.constant 0 : index
    %136 = vector.load %arg6[%c0_50, %c0_51, %c0_52] : memref<1x8x2xf32, #tpu.memory_space<vmem>>, vector<1x8x1xf32>
    %137 = vector.shape_cast %136 : vector<1x8x1xf32> to vector<8x1xf32>
    %138 = vector.shape_cast %135 : vector<8x1xf32> to vector<1x8x1xf32>
    tpu.vector_store %arg6[%c0_50, %c0_51, %c0_52], %138 {strides = array<i32>} : memref<1x8x2xf32, #tpu.memory_space<vmem>>, vector<1x8x1xf32>,
    %139 = arith.mulf %133, %133 : vector<8x256xf32>
    %cst_53 = arith.constant dense<0.000000e+00> : vector<8xf32>
    %140 = vector.multi_reduction <add>, %139, %cst_53 [1] : vector<8x256xf32> to vector<8xf32>
    %141 = vector.shape_cast %140 : vector<8xf32> to vector<8x1xf32>
    %c0_54 = arith.constant 0 : index
    %c0_55 = arith.constant 0 : index
    %c1_56 = arith.constant 1 : index
    %142 = vector.load %arg6[%c0_54, %c0_55, %c1_56] : memref<1x8x2xf32, #tpu.memory_space<vmem>>, vector<1x8x1xf32>
    %143 = vector.shape_cast %142 : vector<1x8x1xf32> to vector<8x1xf32>
    %144 = vector.shape_cast %141 : vector<8x1xf32> to vector<1x8x1xf32>
    tpu.vector_store %arg6[%c0_54, %c0_55, %c1_56], %144 {strides = array<i32>} : memref<1x8x2xf32, #tpu.memory_space<vmem>>, vector<1x8x1xf32>,
    return
  }
  func.func @transform_0(%arg0: i32) -> (i32, i32, i32) {
    %c0_i32 = arith.constant 0 : i32
    %c0_i32_0 = arith.constant 0 : i32
    %c0_i32_1 = arith.constant 0 : i32
    return %arg0, %c0_i32, %c0_i32_0 : i32, i32, i32
  }
  func.func @transform_1(%arg0: i32) -> (i32, i32) {
    %c0_i32 = arith.constant 0 : i32
    %c0_i32_0 = arith.constant 0 : i32
    %c0_i32_1 = arith.constant 0 : i32
    return %c0_i32, %c0_i32_0 : i32, i32
  }
  func.func @transform_2(%arg0: i32) -> (i32, i32) {
    %c0_i32 = arith.constant 0 : i32
    %c0_i32_0 = arith.constant 0 : i32
    %c0_i32_1 = arith.constant 0 : i32
    return %c0_i32, %c0_i32_0 : i32, i32
  }
  func.func @transform_3(%arg0: i32) -> (i32, i32) {
    %c0_i32 = arith.constant 0 : i32
    %c0_i32_0 = arith.constant 0 : i32
    %c0_i32_1 = arith.constant 0 : i32
    return %c0_i32, %c0_i32_0 : i32, i32
  }
  func.func @transform_4(%arg0: i32) -> (i32, i32) {
    %c0_i32 = arith.constant 0 : i32
    %c0_i32_0 = arith.constant 0 : i32
    %c0_i32_1 = arith.constant 0 : i32
    return %c0_i32, %c0_i32_0 : i32, i32
  }
  func.func @transform_5(%arg0: i32) -> (i32, i32, i32) {
    %c0_i32 = arith.constant 0 : i32
    %c0_i32_0 = arith.constant 0 : i32
    %c0_i32_1 = arith.constant 0 : i32
    return %arg0, %c0_i32, %c0_i32_0 : i32, i32, i32
  }
}

module attributes {stable_mosaic.version = 11 : i64} {
  func.func @_dw_stats_kernel(%arg0: i32, %arg1: memref<1x4x256xf32, #tpu.memory_space<vmem>>, %arg2: memref<4x9xf32, #tpu.memory_space<vmem>>, %arg3: memref<1x4x2xf32, #tpu.memory_space<vmem>>, %arg4: memref<4x401xf32, #tpu.memory_space<vmem>>) attributes {dimension_semantics = [#tpu.dimension_semantics<parallel>], iteration_bounds = array<i64: 2>, scalar_prefetch = 0 : i64, scratch_operands = 1 : i64, tpu.core_type = #tpu.core_type<tc>, window_params = [{transform_indices = @transform_0, window_bounds = array<i64: 1, 4, 256>}, {pipeline_mode = #tpu.pipeline_mode<synchronous>, transform_indices = @transform_1, window_bounds = array<i64: 4, 9>}, {transform_indices = @transform_2, window_bounds = array<i64: 1, 4, 2>}]} {
    %cst = arith.constant 0.000000e+00 : f32
    %0 = vector.broadcast %cst : f32 to vector<4x401xf32>
    %c0 = arith.constant 0 : index
    %c0_0 = arith.constant 0 : index
    %1 = vector.load %arg4[%c0, %c0_0] : memref<4x401xf32, #tpu.memory_space<vmem>>, vector<4x401xf32>
    tpu.vector_store %arg4[%c0, %c0_0], %0 {strides = array<i32>} : memref<4x401xf32, #tpu.memory_space<vmem>>, vector<4x401xf32>,
    %c0_1 = arith.constant 0 : index
    %c0_2 = arith.constant 0 : index
    %c0_3 = arith.constant 0 : index
    %2 = vector.load %arg1[%c0_1, %c0_2, %c0_3] : memref<1x4x256xf32, #tpu.memory_space<vmem>>, vector<1x4x256xf32>
    %3 = vector.shape_cast %2 : vector<1x4x256xf32> to vector<4x256xf32>
    %c0_4 = arith.constant 0 : index
    %c128 = arith.constant 128 : index
    %4 = vector.load %arg4[%c0_4, %c128] : memref<4x401xf32, #tpu.memory_space<vmem>>, vector<4x256xf32>
    tpu.vector_store %arg4[%c0_4, %c128], %3 {strides = array<i32>} : memref<4x401xf32, #tpu.memory_space<vmem>>, vector<4x256xf32>,
    %5 = tpu.iota {dimensions = array<i32: 1>} : vector<1x256xi32>
    %c16_i32 = arith.constant 16 : i32
    %c0_i32 = arith.constant 0 : i32
    %6 = arith.cmpi eq, %c16_i32, %c0_i32 : i32
    %c1_i32 = arith.constant 1 : i32
    %7 = arith.select %6, %c1_i32, %c16_i32 : i32
    %8 = vector.broadcast %7 : i32 to vector<1x256xi32>
    %9 = arith.remsi %5, %8 : vector<1x256xi32>
    %c0_i32_5 = arith.constant 0 : i32
    %10 = vector.broadcast %c0_i32_5 : i32 to vector<1x256xi32>
    %11 = arith.cmpi ne, %9, %10 : vector<1x256xi32>
    %c0_i32_6 = arith.constant 0 : i32
    %12 = vector.broadcast %c0_i32_6 : i32 to vector<1x256xi32>
    %13 = arith.cmpi slt, %9, %12 : vector<1x256xi32>
    %c0_i32_7 = arith.constant 0 : i32
    %14 = arith.cmpi slt, %7, %c0_i32_7 : i32
    %15 = vector.broadcast %14 : i1 to vector<1x256xi1>
    %16 = vector.broadcast %15 : vector<1x256xi1> to vector<1x256xi1>
    %17 = arith.xori %13, %16 : vector<1x256xi1>
    %18 = arith.andi %17, %11 : vector<1x256xi1>
    %19 = vector.broadcast %7 : i32 to vector<1x256xi32>
    %20 = arith.addi %9, %19 : vector<1x256xi32>
    %21 = arith.select %18, %20, %9 : vector<1x256xi1>, vector<1x256xi32>
    %cst_8 = arith.constant 0.000000e+00 : f32
    %22 = vector.broadcast %cst_8 : f32 to vector<4x256xf32>
    %c1_i32_9 = arith.constant 1 : i32
    %23 = vector.broadcast %c1_i32_9 : i32 to vector<1x256xi32>
    %24 = arith.cmpi sge, %21, %23 : vector<1x256xi32>
    %c17_i32 = arith.constant 17 : i32
    %25 = vector.broadcast %c17_i32 : i32 to vector<1x256xi32>
    %26 = arith.cmpi slt, %21, %25 : vector<1x256xi32>
    %27 = arith.andi %24, %26 : vector<1x256xi1>
    %28 = arith.extui %27 : vector<1x256xi1> to vector<1x256xi32>
    %29 = arith.sitofp %28 : vector<1x256xi32> to vector<1x256xf32>
    %cst_10 = arith.constant 0.000000e+00 : f32
    %30 = vector.broadcast %cst_10 : f32 to vector<4x256xf32>
    %c0_11 = arith.constant 0 : index
    %c111 = arith.constant 111 : index
    %31 = vector.load %arg4[%c0_11, %c111] : memref<4x401xf32, #tpu.memory_space<vmem>>, vector<4x256xf32>
    %c0_12 = arith.constant 0 : index
    %c0_13 = arith.constant 0 : index
    %32 = vector.load %arg2[%c0_12, %c0_13] : memref<4x9xf32, #tpu.memory_space<vmem>>, vector<4x1xf32>
    %33 = vector.broadcast %32 : vector<4x1xf32> to vector<4x256xf32>
    %34 = arith.mulf %31, %33 : vector<4x256xf32>
    %35 = arith.addf %30, %34 : vector<4x256xf32>
    %c0_14 = arith.constant 0 : index
    %c127 = arith.constant 127 : index
    %36 = vector.load %arg4[%c0_14, %c127] : memref<4x401xf32, #tpu.memory_space<vmem>>, vector<4x256xf32>
    %c0_15 = arith.constant 0 : index
    %c3 = arith.constant 3 : index
    %37 = vector.load %arg2[%c0_15, %c3] : memref<4x9xf32, #tpu.memory_space<vmem>>, vector<4x1xf32>
    %38 = vector.broadcast %37 : vector<4x1xf32> to vector<4x256xf32>
    %39 = arith.mulf %36, %38 : vector<4x256xf32>
    %40 = arith.addf %35, %39 : vector<4x256xf32>
    %c0_16 = arith.constant 0 : index
    %c143 = arith.constant 143 : index
    %41 = vector.load %arg4[%c0_16, %c143] : memref<4x401xf32, #tpu.memory_space<vmem>>, vector<4x256xf32>
    %c0_17 = arith.constant 0 : index
    %c6 = arith.constant 6 : index
    %42 = vector.load %arg2[%c0_17, %c6] : memref<4x9xf32, #tpu.memory_space<vmem>>, vector<4x1xf32>
    %43 = vector.broadcast %42 : vector<4x1xf32> to vector<4x256xf32>
    %44 = arith.mulf %41, %43 : vector<4x256xf32>
    %45 = arith.addf %40, %44 : vector<4x256xf32>
    %46 = vector.broadcast %29 : vector<1x256xf32> to vector<4x256xf32>
    %47 = arith.mulf %45, %46 : vector<4x256xf32>
    %48 = arith.addf %22, %47 : vector<4x256xf32>
    %c0_i32_18 = arith.constant 0 : i32
    %49 = vector.broadcast %c0_i32_18 : i32 to vector<1x256xi32>
    %50 = arith.cmpi sge, %21, %49 : vector<1x256xi32>
    %c16_i32_19 = arith.constant 16 : i32
    %51 = vector.broadcast %c16_i32_19 : i32 to vector<1x256xi32>
    %52 = arith.cmpi slt, %21, %51 : vector<1x256xi32>
    %53 = arith.andi %50, %52 : vector<1x256xi1>
    %54 = arith.extui %53 : vector<1x256xi1> to vector<1x256xi32>
    %55 = arith.sitofp %54 : vector<1x256xi32> to vector<1x256xf32>
    %cst_20 = arith.constant 0.000000e+00 : f32
    %56 = vector.broadcast %cst_20 : f32 to vector<4x256xf32>
    %c0_21 = arith.constant 0 : index
    %c112 = arith.constant 112 : index
    %57 = vector.load %arg4[%c0_21, %c112] : memref<4x401xf32, #tpu.memory_space<vmem>>, vector<4x256xf32>
    %c0_22 = arith.constant 0 : index
    %c1 = arith.constant 1 : index
    %58 = vector.load %arg2[%c0_22, %c1] : memref<4x9xf32, #tpu.memory_space<vmem>>, vector<4x1xf32>
    %59 = vector.broadcast %58 : vector<4x1xf32> to vector<4x256xf32>
    %60 = arith.mulf %57, %59 : vector<4x256xf32>
    %61 = arith.addf %56, %60 : vector<4x256xf32>
    %c0_23 = arith.constant 0 : index
    %c128_24 = arith.constant 128 : index
    %62 = vector.load %arg4[%c0_23, %c128_24] : memref<4x401xf32, #tpu.memory_space<vmem>>, vector<4x256xf32>
    %c0_25 = arith.constant 0 : index
    %c4 = arith.constant 4 : index
    %63 = vector.load %arg2[%c0_25, %c4] : memref<4x9xf32, #tpu.memory_space<vmem>>, vector<4x1xf32>
    %64 = vector.broadcast %63 : vector<4x1xf32> to vector<4x256xf32>
    %65 = arith.mulf %62, %64 : vector<4x256xf32>
    %66 = arith.addf %61, %65 : vector<4x256xf32>
    %c0_26 = arith.constant 0 : index
    %c144 = arith.constant 144 : index
    %67 = vector.load %arg4[%c0_26, %c144] : memref<4x401xf32, #tpu.memory_space<vmem>>, vector<4x256xf32>
    %c0_27 = arith.constant 0 : index
    %c7 = arith.constant 7 : index
    %68 = vector.load %arg2[%c0_27, %c7] : memref<4x9xf32, #tpu.memory_space<vmem>>, vector<4x1xf32>
    %69 = vector.broadcast %68 : vector<4x1xf32> to vector<4x256xf32>
    %70 = arith.mulf %67, %69 : vector<4x256xf32>
    %71 = arith.addf %66, %70 : vector<4x256xf32>
    %72 = vector.broadcast %55 : vector<1x256xf32> to vector<4x256xf32>
    %73 = arith.mulf %71, %72 : vector<4x256xf32>
    %74 = arith.addf %48, %73 : vector<4x256xf32>
    %c-1_i32 = arith.constant -1 : i32
    %75 = vector.broadcast %c-1_i32 : i32 to vector<1x256xi32>
    %76 = arith.cmpi sge, %21, %75 : vector<1x256xi32>
    %c15_i32 = arith.constant 15 : i32
    %77 = vector.broadcast %c15_i32 : i32 to vector<1x256xi32>
    %78 = arith.cmpi slt, %21, %77 : vector<1x256xi32>
    %79 = arith.andi %76, %78 : vector<1x256xi1>
    %80 = arith.extui %79 : vector<1x256xi1> to vector<1x256xi32>
    %81 = arith.sitofp %80 : vector<1x256xi32> to vector<1x256xf32>
    %cst_28 = arith.constant 0.000000e+00 : f32
    %82 = vector.broadcast %cst_28 : f32 to vector<4x256xf32>
    %c0_29 = arith.constant 0 : index
    %c113 = arith.constant 113 : index
    %83 = vector.load %arg4[%c0_29, %c113] : memref<4x401xf32, #tpu.memory_space<vmem>>, vector<4x256xf32>
    %c0_30 = arith.constant 0 : index
    %c2 = arith.constant 2 : index
    %84 = vector.load %arg2[%c0_30, %c2] : memref<4x9xf32, #tpu.memory_space<vmem>>, vector<4x1xf32>
    %85 = vector.broadcast %84 : vector<4x1xf32> to vector<4x256xf32>
    %86 = arith.mulf %83, %85 : vector<4x256xf32>
    %87 = arith.addf %82, %86 : vector<4x256xf32>
    %c0_31 = arith.constant 0 : index
    %c129 = arith.constant 129 : index
    %88 = vector.load %arg4[%c0_31, %c129] : memref<4x401xf32, #tpu.memory_space<vmem>>, vector<4x256xf32>
    %c0_32 = arith.constant 0 : index
    %c5 = arith.constant 5 : index
    %89 = vector.load %arg2[%c0_32, %c5] : memref<4x9xf32, #tpu.memory_space<vmem>>, vector<4x1xf32>
    %90 = vector.broadcast %89 : vector<4x1xf32> to vector<4x256xf32>
    %91 = arith.mulf %88, %90 : vector<4x256xf32>
    %92 = arith.addf %87, %91 : vector<4x256xf32>
    %c0_33 = arith.constant 0 : index
    %c145 = arith.constant 145 : index
    %93 = vector.load %arg4[%c0_33, %c145] : memref<4x401xf32, #tpu.memory_space<vmem>>, vector<4x256xf32>
    %c0_34 = arith.constant 0 : index
    %c8 = arith.constant 8 : index
    %94 = vector.load %arg2[%c0_34, %c8] : memref<4x9xf32, #tpu.memory_space<vmem>>, vector<4x1xf32>
    %95 = vector.broadcast %94 : vector<4x1xf32> to vector<4x256xf32>
    %96 = arith.mulf %93, %95 : vector<4x256xf32>
    %97 = arith.addf %92, %96 : vector<4x256xf32>
    %98 = vector.broadcast %81 : vector<1x256xf32> to vector<4x256xf32>
    %99 = arith.mulf %97, %98 : vector<4x256xf32>
    %100 = arith.addf %74, %99 : vector<4x256xf32>
    %cst_35 = arith.constant dense<0.000000e+00> : vector<4xf32>
    %101 = vector.multi_reduction <add>, %100, %cst_35 [1] : vector<4x256xf32> to vector<4xf32>
    %102 = vector.shape_cast %101 : vector<4xf32> to vector<4x1xf32>
    %c0_36 = arith.constant 0 : index
    %c0_37 = arith.constant 0 : index
    %c0_38 = arith.constant 0 : index
    %103 = vector.load %arg3[%c0_36, %c0_37, %c0_38] : memref<1x4x2xf32, #tpu.memory_space<vmem>>, vector<1x4x1xf32>
    %104 = vector.shape_cast %103 : vector<1x4x1xf32> to vector<4x1xf32>
    %105 = vector.shape_cast %102 : vector<4x1xf32> to vector<1x4x1xf32>
    tpu.vector_store %arg3[%c0_36, %c0_37, %c0_38], %105 {strides = array<i32>} : memref<1x4x2xf32, #tpu.memory_space<vmem>>, vector<1x4x1xf32>,
    %106 = arith.mulf %100, %100 : vector<4x256xf32>
    %cst_39 = arith.constant dense<0.000000e+00> : vector<4xf32>
    %107 = vector.multi_reduction <add>, %106, %cst_39 [1] : vector<4x256xf32> to vector<4xf32>
    %108 = vector.shape_cast %107 : vector<4xf32> to vector<4x1xf32>
    %c0_40 = arith.constant 0 : index
    %c0_41 = arith.constant 0 : index
    %c1_42 = arith.constant 1 : index
    %109 = vector.load %arg3[%c0_40, %c0_41, %c1_42] : memref<1x4x2xf32, #tpu.memory_space<vmem>>, vector<1x4x1xf32>
    %110 = vector.shape_cast %109 : vector<1x4x1xf32> to vector<4x1xf32>
    %111 = vector.shape_cast %108 : vector<4x1xf32> to vector<1x4x1xf32>
    tpu.vector_store %arg3[%c0_40, %c0_41, %c1_42], %111 {strides = array<i32>} : memref<1x4x2xf32, #tpu.memory_space<vmem>>, vector<1x4x1xf32>,
    return
  }
  func.func @transform_0(%arg0: i32) -> (i32, i32, i32) {
    %c0_i32 = arith.constant 0 : i32
    %c0_i32_0 = arith.constant 0 : i32
    %c0_i32_1 = arith.constant 0 : i32
    return %arg0, %c0_i32, %c0_i32_0 : i32, i32, i32
  }
  func.func @transform_1(%arg0: i32) -> (i32, i32) {
    %c0_i32 = arith.constant 0 : i32
    %c0_i32_0 = arith.constant 0 : i32
    %c0_i32_1 = arith.constant 0 : i32
    return %c0_i32, %c0_i32_0 : i32, i32
  }
  func.func @transform_2(%arg0: i32) -> (i32, i32, i32) {
    %c0_i32 = arith.constant 0 : i32
    %c0_i32_0 = arith.constant 0 : i32
    %c0_i32_1 = arith.constant 0 : i32
    return %arg0, %c0_i32, %c0_i32_0 : i32, i32, i32
  }
}

module attributes {stable_mosaic.version = 11 : i64} {
  func.func @_dw_bn_pw_bn_kernel(%arg0: i32, %arg1: memref<1x4x256xf32, #tpu.memory_space<vmem>>, %arg2: memref<4x9xf32, #tpu.memory_space<vmem>>, %arg3: memref<4x1xf32, #tpu.memory_space<vmem>>, %arg4: memref<4x1xf32, #tpu.memory_space<vmem>>, %arg5: memref<8x4xf32, #tpu.memory_space<vmem>>, %arg6: memref<8x1xf32, #tpu.memory_space<vmem>>, %arg7: memref<8x1xf32, #tpu.memory_space<vmem>>, %arg8: memref<1x8x256xf32, #tpu.memory_space<vmem>>, %arg9: memref<4x401xf32, #tpu.memory_space<vmem>>) attributes {dimension_semantics = [#tpu.dimension_semantics<parallel>], iteration_bounds = array<i64: 2>, scalar_prefetch = 0 : i64, scratch_operands = 1 : i64, tpu.core_type = #tpu.core_type<tc>, window_params = [{transform_indices = @transform_0, window_bounds = array<i64: 1, 4, 256>}, {pipeline_mode = #tpu.pipeline_mode<synchronous>, transform_indices = @transform_1, window_bounds = array<i64: 4, 9>}, {pipeline_mode = #tpu.pipeline_mode<synchronous>, transform_indices = @transform_2, window_bounds = array<i64: 4, 1>}, {pipeline_mode = #tpu.pipeline_mode<synchronous>, transform_indices = @transform_3, window_bounds = array<i64: 4, 1>}, {pipeline_mode = #tpu.pipeline_mode<synchronous>, transform_indices = @transform_4, window_bounds = array<i64: 8, 4>}, {pipeline_mode = #tpu.pipeline_mode<synchronous>, transform_indices = @transform_5, window_bounds = array<i64: 8, 1>}, {pipeline_mode = #tpu.pipeline_mode<synchronous>, transform_indices = @transform_6, window_bounds = array<i64: 8, 1>}, {transform_indices = @transform_7, window_bounds = array<i64: 1, 8, 256>}]} {
    %cst = arith.constant 0.000000e+00 : f32
    %0 = vector.broadcast %cst : f32 to vector<4x401xf32>
    %c0 = arith.constant 0 : index
    %c0_0 = arith.constant 0 : index
    %1 = vector.load %arg9[%c0, %c0_0] : memref<4x401xf32, #tpu.memory_space<vmem>>, vector<4x401xf32>
    tpu.vector_store %arg9[%c0, %c0_0], %0 {strides = array<i32>} : memref<4x401xf32, #tpu.memory_space<vmem>>, vector<4x401xf32>,
    %c0_1 = arith.constant 0 : index
    %c0_2 = arith.constant 0 : index
    %c0_3 = arith.constant 0 : index
    %2 = vector.load %arg1[%c0_1, %c0_2, %c0_3] : memref<1x4x256xf32, #tpu.memory_space<vmem>>, vector<1x4x256xf32>
    %3 = vector.shape_cast %2 : vector<1x4x256xf32> to vector<4x256xf32>
    %c0_4 = arith.constant 0 : index
    %c128 = arith.constant 128 : index
    %4 = vector.load %arg9[%c0_4, %c128] : memref<4x401xf32, #tpu.memory_space<vmem>>, vector<4x256xf32>
    tpu.vector_store %arg9[%c0_4, %c128], %3 {strides = array<i32>} : memref<4x401xf32, #tpu.memory_space<vmem>>, vector<4x256xf32>,
    %5 = tpu.iota {dimensions = array<i32: 1>} : vector<1x256xi32>
    %c16_i32 = arith.constant 16 : i32
    %c0_i32 = arith.constant 0 : i32
    %6 = arith.cmpi eq, %c16_i32, %c0_i32 : i32
    %c1_i32 = arith.constant 1 : i32
    %7 = arith.select %6, %c1_i32, %c16_i32 : i32
    %8 = vector.broadcast %7 : i32 to vector<1x256xi32>
    %9 = arith.remsi %5, %8 : vector<1x256xi32>
    %c0_i32_5 = arith.constant 0 : i32
    %10 = vector.broadcast %c0_i32_5 : i32 to vector<1x256xi32>
    %11 = arith.cmpi ne, %9, %10 : vector<1x256xi32>
    %c0_i32_6 = arith.constant 0 : i32
    %12 = vector.broadcast %c0_i32_6 : i32 to vector<1x256xi32>
    %13 = arith.cmpi slt, %9, %12 : vector<1x256xi32>
    %c0_i32_7 = arith.constant 0 : i32
    %14 = arith.cmpi slt, %7, %c0_i32_7 : i32
    %15 = vector.broadcast %14 : i1 to vector<1x256xi1>
    %16 = vector.broadcast %15 : vector<1x256xi1> to vector<1x256xi1>
    %17 = arith.xori %13, %16 : vector<1x256xi1>
    %18 = arith.andi %17, %11 : vector<1x256xi1>
    %19 = vector.broadcast %7 : i32 to vector<1x256xi32>
    %20 = arith.addi %9, %19 : vector<1x256xi32>
    %21 = arith.select %18, %20, %9 : vector<1x256xi1>, vector<1x256xi32>
    %cst_8 = arith.constant 0.000000e+00 : f32
    %22 = vector.broadcast %cst_8 : f32 to vector<4x256xf32>
    %c1_i32_9 = arith.constant 1 : i32
    %23 = vector.broadcast %c1_i32_9 : i32 to vector<1x256xi32>
    %24 = arith.cmpi sge, %21, %23 : vector<1x256xi32>
    %c17_i32 = arith.constant 17 : i32
    %25 = vector.broadcast %c17_i32 : i32 to vector<1x256xi32>
    %26 = arith.cmpi slt, %21, %25 : vector<1x256xi32>
    %27 = arith.andi %24, %26 : vector<1x256xi1>
    %28 = arith.extui %27 : vector<1x256xi1> to vector<1x256xi32>
    %29 = arith.sitofp %28 : vector<1x256xi32> to vector<1x256xf32>
    %cst_10 = arith.constant 0.000000e+00 : f32
    %30 = vector.broadcast %cst_10 : f32 to vector<4x256xf32>
    %c0_11 = arith.constant 0 : index
    %c111 = arith.constant 111 : index
    %31 = vector.load %arg9[%c0_11, %c111] : memref<4x401xf32, #tpu.memory_space<vmem>>, vector<4x256xf32>
    %c0_12 = arith.constant 0 : index
    %c0_13 = arith.constant 0 : index
    %32 = vector.load %arg2[%c0_12, %c0_13] : memref<4x9xf32, #tpu.memory_space<vmem>>, vector<4x1xf32>
    %33 = vector.broadcast %32 : vector<4x1xf32> to vector<4x256xf32>
    %34 = arith.mulf %31, %33 : vector<4x256xf32>
    %35 = arith.addf %30, %34 : vector<4x256xf32>
    %c0_14 = arith.constant 0 : index
    %c127 = arith.constant 127 : index
    %36 = vector.load %arg9[%c0_14, %c127] : memref<4x401xf32, #tpu.memory_space<vmem>>, vector<4x256xf32>
    %c0_15 = arith.constant 0 : index
    %c3 = arith.constant 3 : index
    %37 = vector.load %arg2[%c0_15, %c3] : memref<4x9xf32, #tpu.memory_space<vmem>>, vector<4x1xf32>
    %38 = vector.broadcast %37 : vector<4x1xf32> to vector<4x256xf32>
    %39 = arith.mulf %36, %38 : vector<4x256xf32>
    %40 = arith.addf %35, %39 : vector<4x256xf32>
    %c0_16 = arith.constant 0 : index
    %c143 = arith.constant 143 : index
    %41 = vector.load %arg9[%c0_16, %c143] : memref<4x401xf32, #tpu.memory_space<vmem>>, vector<4x256xf32>
    %c0_17 = arith.constant 0 : index
    %c6 = arith.constant 6 : index
    %42 = vector.load %arg2[%c0_17, %c6] : memref<4x9xf32, #tpu.memory_space<vmem>>, vector<4x1xf32>
    %43 = vector.broadcast %42 : vector<4x1xf32> to vector<4x256xf32>
    %44 = arith.mulf %41, %43 : vector<4x256xf32>
    %45 = arith.addf %40, %44 : vector<4x256xf32>
    %46 = vector.broadcast %29 : vector<1x256xf32> to vector<4x256xf32>
    %47 = arith.mulf %45, %46 : vector<4x256xf32>
    %48 = arith.addf %22, %47 : vector<4x256xf32>
    %c0_i32_18 = arith.constant 0 : i32
    %49 = vector.broadcast %c0_i32_18 : i32 to vector<1x256xi32>
    %50 = arith.cmpi sge, %21, %49 : vector<1x256xi32>
    %c16_i32_19 = arith.constant 16 : i32
    %51 = vector.broadcast %c16_i32_19 : i32 to vector<1x256xi32>
    %52 = arith.cmpi slt, %21, %51 : vector<1x256xi32>
    %53 = arith.andi %50, %52 : vector<1x256xi1>
    %54 = arith.extui %53 : vector<1x256xi1> to vector<1x256xi32>
    %55 = arith.sitofp %54 : vector<1x256xi32> to vector<1x256xf32>
    %cst_20 = arith.constant 0.000000e+00 : f32
    %56 = vector.broadcast %cst_20 : f32 to vector<4x256xf32>
    %c0_21 = arith.constant 0 : index
    %c112 = arith.constant 112 : index
    %57 = vector.load %arg9[%c0_21, %c112] : memref<4x401xf32, #tpu.memory_space<vmem>>, vector<4x256xf32>
    %c0_22 = arith.constant 0 : index
    %c1 = arith.constant 1 : index
    %58 = vector.load %arg2[%c0_22, %c1] : memref<4x9xf32, #tpu.memory_space<vmem>>, vector<4x1xf32>
    %59 = vector.broadcast %58 : vector<4x1xf32> to vector<4x256xf32>
    %60 = arith.mulf %57, %59 : vector<4x256xf32>
    %61 = arith.addf %56, %60 : vector<4x256xf32>
    %c0_23 = arith.constant 0 : index
    %c128_24 = arith.constant 128 : index
    %62 = vector.load %arg9[%c0_23, %c128_24] : memref<4x401xf32, #tpu.memory_space<vmem>>, vector<4x256xf32>
    %c0_25 = arith.constant 0 : index
    %c4 = arith.constant 4 : index
    %63 = vector.load %arg2[%c0_25, %c4] : memref<4x9xf32, #tpu.memory_space<vmem>>, vector<4x1xf32>
    %64 = vector.broadcast %63 : vector<4x1xf32> to vector<4x256xf32>
    %65 = arith.mulf %62, %64 : vector<4x256xf32>
    %66 = arith.addf %61, %65 : vector<4x256xf32>
    %c0_26 = arith.constant 0 : index
    %c144 = arith.constant 144 : index
    %67 = vector.load %arg9[%c0_26, %c144] : memref<4x401xf32, #tpu.memory_space<vmem>>, vector<4x256xf32>
    %c0_27 = arith.constant 0 : index
    %c7 = arith.constant 7 : index
    %68 = vector.load %arg2[%c0_27, %c7] : memref<4x9xf32, #tpu.memory_space<vmem>>, vector<4x1xf32>
    %69 = vector.broadcast %68 : vector<4x1xf32> to vector<4x256xf32>
    %70 = arith.mulf %67, %69 : vector<4x256xf32>
    %71 = arith.addf %66, %70 : vector<4x256xf32>
    %72 = vector.broadcast %55 : vector<1x256xf32> to vector<4x256xf32>
    %73 = arith.mulf %71, %72 : vector<4x256xf32>
    %74 = arith.addf %48, %73 : vector<4x256xf32>
    %c-1_i32 = arith.constant -1 : i32
    %75 = vector.broadcast %c-1_i32 : i32 to vector<1x256xi32>
    %76 = arith.cmpi sge, %21, %75 : vector<1x256xi32>
    %c15_i32 = arith.constant 15 : i32
    %77 = vector.broadcast %c15_i32 : i32 to vector<1x256xi32>
    %78 = arith.cmpi slt, %21, %77 : vector<1x256xi32>
    %79 = arith.andi %76, %78 : vector<1x256xi1>
    %80 = arith.extui %79 : vector<1x256xi1> to vector<1x256xi32>
    %81 = arith.sitofp %80 : vector<1x256xi32> to vector<1x256xf32>
    %cst_28 = arith.constant 0.000000e+00 : f32
    %82 = vector.broadcast %cst_28 : f32 to vector<4x256xf32>
    %c0_29 = arith.constant 0 : index
    %c113 = arith.constant 113 : index
    %83 = vector.load %arg9[%c0_29, %c113] : memref<4x401xf32, #tpu.memory_space<vmem>>, vector<4x256xf32>
    %c0_30 = arith.constant 0 : index
    %c2 = arith.constant 2 : index
    %84 = vector.load %arg2[%c0_30, %c2] : memref<4x9xf32, #tpu.memory_space<vmem>>, vector<4x1xf32>
    %85 = vector.broadcast %84 : vector<4x1xf32> to vector<4x256xf32>
    %86 = arith.mulf %83, %85 : vector<4x256xf32>
    %87 = arith.addf %82, %86 : vector<4x256xf32>
    %c0_31 = arith.constant 0 : index
    %c129 = arith.constant 129 : index
    %88 = vector.load %arg9[%c0_31, %c129] : memref<4x401xf32, #tpu.memory_space<vmem>>, vector<4x256xf32>
    %c0_32 = arith.constant 0 : index
    %c5 = arith.constant 5 : index
    %89 = vector.load %arg2[%c0_32, %c5] : memref<4x9xf32, #tpu.memory_space<vmem>>, vector<4x1xf32>
    %90 = vector.broadcast %89 : vector<4x1xf32> to vector<4x256xf32>
    %91 = arith.mulf %88, %90 : vector<4x256xf32>
    %92 = arith.addf %87, %91 : vector<4x256xf32>
    %c0_33 = arith.constant 0 : index
    %c145 = arith.constant 145 : index
    %93 = vector.load %arg9[%c0_33, %c145] : memref<4x401xf32, #tpu.memory_space<vmem>>, vector<4x256xf32>
    %c0_34 = arith.constant 0 : index
    %c8 = arith.constant 8 : index
    %94 = vector.load %arg2[%c0_34, %c8] : memref<4x9xf32, #tpu.memory_space<vmem>>, vector<4x1xf32>
    %95 = vector.broadcast %94 : vector<4x1xf32> to vector<4x256xf32>
    %96 = arith.mulf %93, %95 : vector<4x256xf32>
    %97 = arith.addf %92, %96 : vector<4x256xf32>
    %98 = vector.broadcast %81 : vector<1x256xf32> to vector<4x256xf32>
    %99 = arith.mulf %97, %98 : vector<4x256xf32>
    %100 = arith.addf %74, %99 : vector<4x256xf32>
    %c0_35 = arith.constant 0 : index
    %c0_36 = arith.constant 0 : index
    %101 = vector.load %arg3[%c0_35, %c0_36] : memref<4x1xf32, #tpu.memory_space<vmem>>, vector<4x1xf32>
    %102 = vector.broadcast %101 : vector<4x1xf32> to vector<4x256xf32>
    %103 = arith.mulf %100, %102 : vector<4x256xf32>
    %c0_37 = arith.constant 0 : index
    %c0_38 = arith.constant 0 : index
    %104 = vector.load %arg4[%c0_37, %c0_38] : memref<4x1xf32, #tpu.memory_space<vmem>>, vector<4x1xf32>
    %105 = vector.broadcast %104 : vector<4x1xf32> to vector<4x256xf32>
    %106 = arith.addf %103, %105 : vector<4x256xf32>
    %cst_39 = arith.constant 0.000000e+00 : f32
    %107 = vector.broadcast %cst_39 : f32 to vector<4x256xf32>
    %108 = arith.maximumf %106, %107 : vector<4x256xf32>
    %cst_40 = arith.constant 0.000000e+00 : f32
    %109 = vector.broadcast %cst_40 : f32 to vector<8x256xf32>
    %c0_41 = arith.constant 0 : index
    %c0_42 = arith.constant 0 : index
    %110 = vector.load %arg5[%c0_41, %c0_42] : memref<8x4xf32, #tpu.memory_space<vmem>>, vector<8x1xf32>
    %111 = vector.extract_strided_slice %108 {offsets = [0, 0], sizes = [1, 256], strides = [1, 1]} : vector<4x256xf32> to vector<1x256xf32>
    %112 = vector.broadcast %110 : vector<8x1xf32> to vector<8x256xf32>
    %113 = vector.broadcast %111 : vector<1x256xf32> to vector<8x256xf32>
    %114 = arith.mulf %112, %113 : vector<8x256xf32>
    %115 = arith.addf %109, %114 : vector<8x256xf32>
    %c0_43 = arith.constant 0 : index
    %c1_44 = arith.constant 1 : index
    %116 = vector.load %arg5[%c0_43, %c1_44] : memref<8x4xf32, #tpu.memory_space<vmem>>, vector<8x1xf32>
    %117 = vector.extract_strided_slice %108 {offsets = [1, 0], sizes = [1, 256], strides = [1, 1]} : vector<4x256xf32> to vector<1x256xf32>
    %118 = vector.broadcast %116 : vector<8x1xf32> to vector<8x256xf32>
    %119 = vector.broadcast %117 : vector<1x256xf32> to vector<8x256xf32>
    %120 = arith.mulf %118, %119 : vector<8x256xf32>
    %121 = arith.addf %115, %120 : vector<8x256xf32>
    %c0_45 = arith.constant 0 : index
    %c2_46 = arith.constant 2 : index
    %122 = vector.load %arg5[%c0_45, %c2_46] : memref<8x4xf32, #tpu.memory_space<vmem>>, vector<8x1xf32>
    %123 = vector.extract_strided_slice %108 {offsets = [2, 0], sizes = [1, 256], strides = [1, 1]} : vector<4x256xf32> to vector<1x256xf32>
    %124 = vector.broadcast %122 : vector<8x1xf32> to vector<8x256xf32>
    %125 = vector.broadcast %123 : vector<1x256xf32> to vector<8x256xf32>
    %126 = arith.mulf %124, %125 : vector<8x256xf32>
    %127 = arith.addf %121, %126 : vector<8x256xf32>
    %c0_47 = arith.constant 0 : index
    %c3_48 = arith.constant 3 : index
    %128 = vector.load %arg5[%c0_47, %c3_48] : memref<8x4xf32, #tpu.memory_space<vmem>>, vector<8x1xf32>
    %129 = vector.extract_strided_slice %108 {offsets = [3, 0], sizes = [1, 256], strides = [1, 1]} : vector<4x256xf32> to vector<1x256xf32>
    %130 = vector.broadcast %128 : vector<8x1xf32> to vector<8x256xf32>
    %131 = vector.broadcast %129 : vector<1x256xf32> to vector<8x256xf32>
    %132 = arith.mulf %130, %131 : vector<8x256xf32>
    %133 = arith.addf %127, %132 : vector<8x256xf32>
    %c0_49 = arith.constant 0 : index
    %c0_50 = arith.constant 0 : index
    %134 = vector.load %arg6[%c0_49, %c0_50] : memref<8x1xf32, #tpu.memory_space<vmem>>, vector<8x1xf32>
    %135 = vector.broadcast %134 : vector<8x1xf32> to vector<8x256xf32>
    %136 = arith.mulf %133, %135 : vector<8x256xf32>
    %c0_51 = arith.constant 0 : index
    %c0_52 = arith.constant 0 : index
    %137 = vector.load %arg7[%c0_51, %c0_52] : memref<8x1xf32, #tpu.memory_space<vmem>>, vector<8x1xf32>
    %138 = vector.broadcast %137 : vector<8x1xf32> to vector<8x256xf32>
    %139 = arith.addf %136, %138 : vector<8x256xf32>
    %cst_53 = arith.constant 0.000000e+00 : f32
    %140 = vector.broadcast %cst_53 : f32 to vector<8x256xf32>
    %141 = arith.maximumf %139, %140 : vector<8x256xf32>
    %c0_54 = arith.constant 0 : index
    %c0_55 = arith.constant 0 : index
    %c0_56 = arith.constant 0 : index
    %142 = vector.load %arg8[%c0_54, %c0_55, %c0_56] : memref<1x8x256xf32, #tpu.memory_space<vmem>>, vector<1x8x256xf32>
    %143 = vector.shape_cast %142 : vector<1x8x256xf32> to vector<8x256xf32>
    %144 = vector.shape_cast %141 : vector<8x256xf32> to vector<1x8x256xf32>
    tpu.vector_store %arg8[%c0_54, %c0_55, %c0_56], %144 {strides = array<i32>} : memref<1x8x256xf32, #tpu.memory_space<vmem>>, vector<1x8x256xf32>,
    return
  }
  func.func @transform_0(%arg0: i32) -> (i32, i32, i32) {
    %c0_i32 = arith.constant 0 : i32
    %c0_i32_0 = arith.constant 0 : i32
    %c0_i32_1 = arith.constant 0 : i32
    return %arg0, %c0_i32, %c0_i32_0 : i32, i32, i32
  }
  func.func @transform_1(%arg0: i32) -> (i32, i32) {
    %c0_i32 = arith.constant 0 : i32
    %c0_i32_0 = arith.constant 0 : i32
    %c0_i32_1 = arith.constant 0 : i32
    return %c0_i32, %c0_i32_0 : i32, i32
  }
  func.func @transform_2(%arg0: i32) -> (i32, i32) {
    %c0_i32 = arith.constant 0 : i32
    %c0_i32_0 = arith.constant 0 : i32
    %c0_i32_1 = arith.constant 0 : i32
    return %c0_i32, %c0_i32_0 : i32, i32
  }
  func.func @transform_3(%arg0: i32) -> (i32, i32) {
    %c0_i32 = arith.constant 0 : i32
    %c0_i32_0 = arith.constant 0 : i32
    %c0_i32_1 = arith.constant 0 : i32
    return %c0_i32, %c0_i32_0 : i32, i32
  }
  func.func @transform_4(%arg0: i32) -> (i32, i32) {
    %c0_i32 = arith.constant 0 : i32
    %c0_i32_0 = arith.constant 0 : i32
    %c0_i32_1 = arith.constant 0 : i32
    return %c0_i32, %c0_i32_0 : i32, i32
  }
  func.func @transform_5(%arg0: i32) -> (i32, i32) {
    %c0_i32 = arith.constant 0 : i32
    %c0_i32_0 = arith.constant 0 : i32
    %c0_i32_1 = arith.constant 0 : i32
    return %c0_i32, %c0_i32_0 : i32, i32
  }
  func.func @transform_6(%arg0: i32) -> (i32, i32) {
    %c0_i32 = arith.constant 0 : i32
    %c0_i32_0 = arith.constant 0 : i32
    %c0_i32_1 = arith.constant 0 : i32
    return %c0_i32, %c0_i32_0 : i32, i32
  }
  func.func @transform_7(%arg0: i32) -> (i32, i32, i32) {
    %c0_i32 = arith.constant 0 : i32
    %c0_i32_0 = arith.constant 0 : i32
    %c0_i32_1 = arith.constant 0 : i32
    return %arg0, %c0_i32, %c0_i32_0 : i32, i32, i32
  }
}

</mosaic_0001>

<bundles_post_ra>
// kernel: depthwise_conv2d_bn.3
= control target key start
LH: loop header
LB: loop body
LE: loop exit
PB: predicated region body
PF: predicated region fallthrough
CT: control target
= control target key end

     0   :  { %s655_s9 = smov 0   ;;  %s749_s0 = inlined_call_operand.vmem [shape: f32[2,4,256], index: 0, kind: input, shape index: {}]   ;;  %s750_s1 = inlined_call_operand.vmem [shape: f32[4,9], index: 1, kind: input, shape index: {}]   ;;  %s751_s2 = inlined_call_operand.vmem [shape: f32[2,4,2], index: 2, kind: output, shape index: {}]  }
   0x1 LB: > { %s561_s10 = sadd.s32 4294967295, %s619_s9   ;;  %p565_p0 = scmp.ge.s32.totalorder %s619_s9, 1  ;;  %s619_s9 = sphi %s655_s9, %s12_s9  }
   0x2   : > { %p112_p1 = scmp.lt.s32.totalorder %s619_s9, 3 }
   0x4   : > { %p113_p2 = pnand %p565_p0, %p112_p1 }
   0x5   : > { %p133_p3 = scmp.lt.s32.totalorder (!%p113_p2), %s561_s10, 1  ;;  %s631_s17 = smov (!%p113_p2), 112  }
   0x6   : > { %116 = sbr.rel (%p113_p2) target bundleno = 652 (0x28c), region = 28  ;;  %s634_s18 = smov (!%p113_p2), 113  }
   0x7   : > { %s635_s19 = smov (!%p113_p2), 96   ;;  %s636_s20 = smov (!%p113_p2), 111  }
   0x8   : > { %s637_s21 = smov (!%p113_p2), 127   ;;  %s638_s22 = smov (!%p113_p2), 126  }
   0x9   : > { %s639_s23 = smov (!%p113_p2), 17  }
   0xb   : > { %v666_v0 = vld [vmem:[%s750_s1] sm:$0xf]  ;;  %v621_v1 = vmov 5   ;;  %v622_v2 = vmov 4   ;;  %v623_v3 = vmov 3   ;;  %v624_v4 = vmov 7  }
   0xc   : > { %605 = vset.pattern.permute.xlu1 %v621_v1  ;;  %603 = vset.pattern.permute.xlu0 %v622_v2  ;;  %v625_v5 = vmov 8   ;;  %v626_v6 = vmov 1   ;;  %v627_v7 = vmov 6   ;;  %s753_s10 = smov (!%p133_p3, %s561_s10), 1  ;;  %vm143_vm0 = vcmask 1043456  }
   0xd   : > { %382 = vperm.xlu1 %605, %v666_v0   ;;  %292 = vperm.xlu0 %603, %v666_v0   ;;  %vm144_vm1 = vcmask 138244   ;;  %s575_s13 = sshll.u32 %s753_s10, 3  ;;  %v628_v8 = vmov 0.0   ;;  %v629_v10 = vmov 2   ;;  %v630_v11 = vmov 1.0   ;;  %s568_s24 = sshll.u32 %s753_s10, 2 }
   0xe   : > { %607 = vset.pattern.permute.xlu2 %v623_v3  ;;  %vm145_vm2 = vmor %vm144_vm1, %vm143_vm0  ;;  %142 = vst [vmem:[#allocation2] sm:$0xff] %v628_v8  ;;  %s137_s16 = scalar_lea.vmem %s749_s0, %s575_s13  ;;  %v334_v12 = vrot.slane %v630_v11, 4  ;;  %v149_v14 = vlaneseq  ;;  %v632_v17 = vmov 839922192   ;;  %v633_v21 = vmov 0   ;;  %s141_s27 = scalar_lea.vmem %s751_s2, %s568_s24 }
   0xf   : > { %203 = vperm.xlu2 %607, %v666_v0   ;;  %146 = vst.msk [vmem:[#allocation2 + $0x8] sm:$0xff] %vm145_vm2, %v628_v8  ;;  %v682_v9 = vld [vmem:[%s137_s16] sm:$0xff]  ;;  %v194_v18 = vunpack.c.l.s4 %v632_v17  ;;  %vm221_vm7 = vcmask 916480   ;;  %vm246_vm8 = vcmask 785408   ;;  %vm434_vm9 = vcmask 924672  }
  0x10   : > { %148 = vst [vmem:[#allocation2 + $0x4] sm:$0xff] %v682_v9  ;;  %v335_v13 = vsel %vm143_vm0, 1.0, %v334_v12  ;;  %v150_v15 = vand.u32 127, %v149_v14  ;;  %vm260_vm10 = vcmask 908288   ;;  %vm353_vm11 = vcmask 1039360  }
  0x11   : > { %v688_v20 = vunpack.c.0.s8 %v194_v18  ;;  %vm449_vm12 = vcmask 1031168   ;;  %vm469_vm13 = vcmask 138240   ;;  %vm479_vm14 = vcmask 3072  }
  0x12   : > { %v151_v16 = vadd.s32 128, %v150_v15  ;;  %v156_v25 = vand.u32 15, %v150_v15  ;;  %vm506_vm15 = vcmask 11272  }
  0x14   : > { %v163_v19 = vand.u32 15, %v151_v16  ;;  %vm361_vm4 = vcmp.lt.s32.totalorder %v156_v25, 15  ;;  %vm176_vm6 = vcmp.ge.s32.totalorder %v156_v25, 1 }
  0x15   : > { %604 = vset.pattern.permute.xlu0 %v624_v4  ;;  %606 = vset.pattern.permute.xlu1 %v625_v5  ;;  %v571_v33 = vsel %vm361_vm4, 1.0, %v628_v8  ;;  %v569_v44 = vsel %vm176_vm6, 1.0, %v628_v8 }
  0x16   : > { %310 = vperm.xlu0 %604, %v666_v0   ;;  %405 = vperm.xlu1 %606, %v666_v0   ;;  %v228_v23 = vld [vmem:[#allocation2 + $0xc] sm:$0xf]  ;;  %vm362_vm3 = vcmp.lt.s32.totalorder %v163_v19, 15  ;;  %vm177_vm5 = vcmp.ge.s32.totalorder %v163_v19, 1 }
  0x17   : > { %608 = vset.pattern.permute.xlu2 %v626_v6  ;;  %v572_v31 = vsel %vm362_vm3, 1.0, %v628_v8  ;;  %v570_v39 = vsel %vm177_vm5, 1.0, %v628_v8  ;;  %v701_v45 = vld [vmem:[#allocation2] sm:$0xff]  ;;  %v706_v51 = vld [vmem:[#allocation2 + $0x8] sm:$0xf] }
  0x18   : > { %279 = vperm.xlu2 %608, %v666_v0   ;;  %v429_v32 = vrot.slane %v572_v31, 4  ;;  %v255_v43 = vrot.slane %v570_v39, 4 }
  0x1a   : > { %v430_v38 = vsel %vm143_vm0, %v571_v33, %v429_v32  ;;  %v256_v47 = vsel %vm143_vm0, %v569_v44, %v255_v43 }
  0x1e   : > { %610 = vset.pattern.permute.xlu0 %v627_v7  ;;  %611 = vset.pattern.permute.xlu1 %v633_v21 }
  0x1f   : > { %230 = vperm.xlu0 %610, %v666_v0  }
  0x20   : > { %609 = vset.pattern.permute.xlu2 %v629_v10 }
  0x21   : > { %370 = vperm.xlu2 %609, %v666_v0  }
  0x27   : > { %612 = vset.pattern.permute.xlu0 %v625_v5 }
  0x29   : > { %336 = vrot.lane.b32.xlu2 %v335_v13, %s631_s17 }
  0x69   : > { %v204_v42 = vpop.permute.xlu2 %203 }
  0x6a   : > { %v208_v46 = vperm.slane %v204_v42, %v688_v20 }
  0x6c   : > { %v210_v48 = vmul.f32 %v208_v46, %v701_v45  ;;  %v211_v53 = vmul.f32 %v208_v46, %v706_v51 }
  0x72   : > { %v280_v57 = vpop.permute.xlu2 %279 }
  0x73   : > { %v284_v61 = vperm.slane %v280_v57, %v688_v20 }
  0x75   : > { %v286_v1 = vmul.f32 %v284_v61, %v701_v45  ;;  %v287_v8 = vmul.f32 %v284_v61, %v706_v51 }
  0x7b   : > { %v371_v58 = vpop.permute.xlu2 %370 }
  0x7c   : > { %v375_v15 = vperm.slane %v371_v58, %v688_v20 }
  0x7e   : > { %v377_v19 = vmul.f32 %v375_v15, %v701_v45  ;;  %v378_v21 = vmul.f32 %v375_v15, %v706_v51 }
  0x7f   : > { %v383_v22 = vpop.permute.xlu1 %382  ;;  %v293_v24 = vpop.permute.xlu0 %292 }
  0x80   : > { %v387_v26 = vperm.slane %v383_v22, %v688_v20  ;;  %v297_v27 = vperm.slane %v293_v24, %v688_v20 }
  0x82   : > { %v389_v28 = vmul.f32 %v387_v26, %v682_v9  ;;  %v390_v29 = vmul.f32 %v387_v26, %v228_v23  ;;  %v299_v30 = vmul.f32 %v297_v27, %v682_v9 }
  0x83   : > { %v337_v62 = vpop.permute.xlu2 %336 }
  0x84   : > { %395 = vrot.lane.b32.xlu0 %v390_v29, %s631_s17  ;;  %301 = vrot.lane.b32.xlu1 %v299_v30, %s631_s17  ;;  %v338_v3 = vrot.slane %v337_v62, 4 }
  0x85   : > { %393 = vrot.lane.b32.xlu2 %v389_v28, %s631_s17 }
  0x86   : > { %v339_v7 = vsel %vm221_vm7, %v338_v3, %v337_v62 }
  0x88   : > { %v311_v34 = vpop.permute.xlu0 %310  ;;  %v406_v35 = vpop.permute.xlu1 %405 }
  0x89   : > { %v315_v36 = vperm.slane %v311_v34, %v688_v20  ;;  %v410_v37 = vperm.slane %v406_v35, %v688_v20 }
  0x8b   : > { %v317_v40 = vmul.f32 %v315_v36, %v682_v9  ;;  %v413_v41 = vmul.f32 %v410_v37, %v228_v23  ;;  %v318_v49 = vmul.f32 %v315_v36, %v228_v23  ;;  %v412_v54 = vmul.f32 %v410_v37, %v682_v9 }
  0x8c   : > { %431 = vrot.lane.b32.xlu0 %v430_v38, %s634_s18 }
  0x8d   : > { %321 = vrot.lane.b32.xlu1 %v317_v40, %s635_s19  ;;  %418 = vrot.lane.b32.xlu2 %v413_v41, %s635_s19 }
  0x91   : > { %v231_v50 = vpop.permute.xlu0 %230 }
  0x92   : > { %v235_v52 = vperm.slane %v231_v50, %v688_v20 }
  0x94   : > { %257 = vrot.lane.b32.xlu0 %v256_v47, %s636_s20  ;;  %v238_v55 = vmul.f32 %v235_v52, %v228_v23  ;;  %v237_v56 = vmul.f32 %v235_v52, %v682_v9 }
  0x95   : > { %323 = vrot.lane.b32.xlu1 %v318_v49, %s635_s19  ;;  %214 = vrot.lane.b32.xlu2 %v210_v48, %s631_s17 }
  0x9c   : > { %216 = vrot.lane.b32.xlu0 %v211_v53, %s631_s17 }
  0x9d   : > { %416 = vrot.lane.b32.xlu1 %v412_v54, %s635_s19  ;;  %243 = vrot.lane.b32.xlu2 %v238_v55, %s635_s19 }
  0xa5   : > { %191 = vperm.xlu1 %611, %v666_v0  }
  0xad   : > { %241 = vrot.lane.b32.xlu1 %v237_v56, %s635_s19 }
  0xdf   : > { %v394_v11 = vpop.permute.xlu2 %393 }
  0xe0   : > { %v397_v17 = vrot.slane %v394_v11, 4 }
  0xe2   : > { %v398_v23 = vsel %vm221_vm7, %v397_v17, %v394_v11 }
  0xe3   : > { %v402_v28 = vadd.f32 %v398_v23, %v377_v19 }
  0xe7   : > { %v419_v30 = vpop.permute.xlu2 %418 }
  0xef   : > { %v215_v40 = vpop.permute.xlu2 %214 }
  0xf0   : > { %v218_v43 = vrot.slane %v215_v40, 4 }
  0xf6   : > { %v302_v59 = vpop.permute.xlu1 %301  ;;  %v396_v9 = vpop.permute.xlu0 %395 }
  0xf7   : > { %v303_v60 = vrot.slane %v302_v59, 4  ;;  %v399_v24 = vsel %vm221_vm7, %v397_v17, %v396_v9  ;;  %v244_v46 = vpop.permute.xlu2 %243 }
  0xf8   : > { %v403_v29 = vadd.f32 %v399_v24, %v378_v21 }
  0xf9   : > { %v304_v63 = vsel %vm221_vm7, %v303_v60, %v302_v59  ;;  %v308_v12 = vadd.f32 %v303_v60, %v287_v8 }
  0xfa   : > { %v307_v0 = vadd.f32 %v304_v63, %v286_v1 }
  0xfe   : > { %v432_v22 = vpop.permute.xlu0 %431 }
  0xff   : > { %v322_v2 = vpop.permute.xlu1 %321  ;;  %v433_v26 = vrot.slane %v432_v22, 4 }
 0x100   : > { %v325_v4 = vrot.slane %v322_v2, 4 }
 0x101   : > { %v435_v35 = vsel %vm434_vm9, %v433_v26, %v432_v22 }
 0x102   : > { %v326_v5 = vsel %vm246_vm8, %v325_v4, %v322_v2 }
 0x103   : > { %v330_v6 = vadd.f32 %v326_v5, %v307_v0 }
 0x105   : > { %v342_v10 = vmul.f32 %v339_v7, %v330_v6 }
 0x106   : > { %v258_v38 = vpop.permute.xlu0 %257 }
 0x107   : > { %v324_v13 = vpop.permute.xlu1 %323  ;;  %346 = vrot.lane.b32.xlu1 %v342_v10, %s637_s21  ;;  %v259_v59 = vrot.slane %v258_v38, 4 }
 0x108   : > { %v327_v14 = vsel %vm246_vm8, %v325_v4, %v324_v13 }
 0x109   : > { %v331_v16 = vadd.f32 %v327_v14, %v308_v12  ;;  %v261_v63 = vsel %vm260_vm10, %v259_v59, %v258_v38 }
 0x10b   : > { %v343_v18 = vmul.f32 %v338_v3, %v331_v16 }
 0x10d   : > { %348 = vrot.lane.b32.xlu2 %v343_v18, %s637_s21 }
 0x10e   : > { %v217_v41 = vpop.permute.xlu0 %216 }
 0x10f   : > { %v417_v25 = vpop.permute.xlu1 %416  ;;  %v219_v42 = vrot.slane %v217_v41, 4 }
 0x110   : > { %v420_v27 = vrot.slane %v417_v25, 4 }
 0x111   : > { %v220_v49 = vsel %vm143_vm0, %v218_v43, %v219_v42 }
 0x112   : > { %v421_v31 = vsel %vm246_vm8, %v420_v27, %v417_v25  ;;  %v422_v32 = vsel %vm246_vm8, %v420_v27, %v419_v30  ;;  %v222_v54 = vsel %vm221_vm7, %v215_v40, %v220_v49 }
 0x113   : > { %v425_v33 = vadd.f32 %v421_v31, %v402_v28  ;;  %v426_v34 = vadd.f32 %v422_v32, %v403_v29 }
 0x115   : > { %v438_v36 = vmul.f32 %v435_v35, %v425_v33  ;;  %v439_v37 = vmul.f32 %v433_v26, %v426_v34 }
 0x117   : > { %442 = vrot.lane.b32.xlu0 %v438_v36, %s638_s22  ;;  %444 = vrot.lane.b32.xlu1 %v439_v37, %s638_s22  ;;  %v192_v39 = vpop.permute.xlu1 %191 }
 0x118   : > { %v196_v47 = vperm.slane %v192_v39, %v688_v20 }
 0x11a   : > { %v199_v48 = vmul.f32 %v196_v47, %v706_v51  ;;  %v198_v50 = vmul.f32 %v196_v47, %v701_v45 }
 0x11c   : > { %v226_v53 = vadd.f32 %v217_v41, %v199_v48  ;;  %v225_v57 = vadd.f32 %v222_v54, %v198_v50 }
 0x11f   : > { %v242_v44 = vpop.permute.xlu1 %241 }
 0x120   : > { %v245_v52 = vrot.slane %v242_v44, 4 }
 0x122   : > { %v248_v55 = vsel %vm246_vm8, %v245_v52, %v244_v46  ;;  %v247_v60 = vsel %vm246_vm8, %v245_v52, %v242_v44 }
 0x123   : > { %v252_v61 = vadd.f32 %v248_v55, %v226_v53  ;;  %v251_v62 = vadd.f32 %v247_v60, %v225_v57 }
 0x125   : > { %v265_v1 = vmul.f32 %v259_v59, %v252_v61  ;;  %v264_v3 = vmul.f32 %v261_v63, %v251_v62 }
 0x167   : > { %v349_v58 = vpop.permute.xlu2 %348 }
 0x168   : > { %v351_v51 = vrot.slane %v349_v58, 4  ;;  %v358_v2 = vadd.f32 %v349_v58, %v265_v1 }
 0x179   : > { %v347_v56 = vpop.permute.xlu1 %346 }
 0x17a   : > { %v350_v20 = vrot.slane %v347_v56, 4 }
 0x17c   : > { %v352_v45 = vsel %vm143_vm0, %v350_v20, %v351_v51 }
 0x17d   : > { %v354_v4 = vsel %vm353_vm11, %v347_v56, %v352_v45 }
 0x17e   : > { %v357_v9 = vadd.f32 %v354_v4, %v264_v3 }
 0x189   : > { %v443_v0 = vpop.permute.xlu0 %442  ;;  %v445_v5 = vpop.permute.xlu1 %444 }
 0x18a   : > { %v446_v6 = vrot.slane %v443_v0, 4  ;;  %v447_v7 = vrot.slane %v445_v5, 4  ;;  %v454_v8 = vadd.f32 %v445_v5, %v358_v2 }
 0x18c   : > { %v448_v10 = vsel %vm143_vm0, %v446_v6, %v447_v7  ;;  %459 = vst [vmem:[#allocation1 + $0x10] ss:$2 sm:$0xff] %v454_v8  ;;  %v482_v13 = vmul.f32 %v454_v8, %v454_v8 }
 0x18d   : > { %v450_v11 = vsel %vm449_vm12, %v443_v0, %v448_v10 }
 0x18e   : > { %v453_v12 = vadd.f32 %v450_v11, %v357_v9 }
 0x190   : > { %457 = vst [vmem:[#allocation1] ss:$2 sm:$0xff] %v453_v12  ;;  %v481_v15 = vmul.f32 %v453_v12, %v453_v12 }
 0x193   : > { %v462_v14 = vld.sshfl [vmem:[#allocation1 + $0x10] sm:$0xff pattern:$0x75316420] }
 0x194   : > { %467 = vrot.lane.b32.xlu1 %v462_v14, %s639_s23  ;;  %487 = vst [vmem:[#allocation1 + $0x10] ss:$2 sm:$0xff] %v482_v13 }
 0x197   : > { %v461_v16 = vld.sshfl [vmem:[#allocation1 + $0x8] sm:$0xff pattern:$0x75316420]  ;;  %v460_v17 = vld.sshfl [vmem:[#allocation1] sm:$0xff pattern:$0x75316420] }
 0x198   : > { %465 = vrot.lane.b32.xlu0 %v461_v16, %s639_s23  ;;  %463 = vrot.lane.b32.xlu2 %v460_v17, %s639_s23  ;;  %485 = vst [vmem:[#allocation1] ss:$2 sm:$0xff] %v481_v15 }
 0x19b   : > { %v490_v18 = vld.sshfl [vmem:[#allocation1 + $0x10] sm:$0xff pattern:$0x75316420] }
 0x19c   : > { %495 = vrot.lane.b32.xlu1 %v490_v18, %s639_s23 }
 0x19f   : > { %v489_v19 = vld.sshfl [vmem:[#allocation1 + $0x8] sm:$0xff pattern:$0x75316420]  ;;  %v488_v21 = vld.sshfl [vmem:[#allocation1] sm:$0xff pattern:$0x75316420] }
 0x1a0   : > { %493 = vrot.lane.b32.xlu0 %v489_v19, %s639_s23  ;;  %491 = vrot.lane.b32.xlu2 %v488_v21, %s639_s23 }
 0x1f2   : > { %v464_v22 = vpop.permute.xlu2 %463 }
 0x1fa   : > { %v492_v30 = vpop.permute.xlu2 %491 }
 0x206   : > { %v468_v23 = vpop.permute.xlu1 %467 }
 0x20a   : > { %v466_v24 = vpop.permute.xlu0 %465 }
 0x20b   : > { %v470_v25 = vsel %vm469_vm13, %v464_v22, %v466_v24  ;;  %v471_v26 = vsel %vm469_vm13, %v466_v24, %v468_v23 }
 0x20c   : > { %v474_v27 = vsel %vm143_vm0, %v470_v25, 0.0  ;;  %v475_v28 = vsel %vm143_vm0, %v471_v26, 0.0 }
 0x20d   : > { %v476_v29 = vadd.f32 %v475_v28, %v474_v27 }
 0x20e   : > { %v496_v31 = vpop.permute.xlu1 %495 }
 0x20f   : > { %477 = vadd.xlane.f32.xlu2 %v476_v29 }
 0x212   : > { %v494_v32 = vpop.permute.xlu0 %493 }
 0x213   : > { %v497_v33 = vsel %vm469_vm13, %v492_v30, %v494_v32  ;;  %v498_v34 = vsel %vm469_vm13, %v494_v32, %v496_v31 }
 0x214   : > { %v501_v35 = vsel %vm143_vm0, %v497_v33, 0.0  ;;  %v502_v36 = vsel %vm143_vm0, %v498_v34, 0.0 }
 0x215   : > { %v503_v37 = vadd.f32 %v502_v36, %v501_v35 }
 0x217   : > { %504 = vadd.xlane.f32.xlu0 %v503_v37 }
 0x282   : > { %v478_v38 = vpop.xlane.xlu2 %477 }
 0x283   : > { %480 = vst.msk [vmem:[%s141_s27] sm:$0xf] %vm479_vm14, %v478_v38 }
 0x28a   : > { %v505_v39 = vpop.xlane.xlu0 %504 }
 0x28b   : > { %507 = vst.msk [vmem:[%s141_s27] sm:$0xf] %vm506_vm15, %v505_v39 }
 0x28c PF: > { %s12_s9 = sadd.s32 1, %s619_s9  }
 0x28d   : > { %p9_p4 = scmp.ge.s32.totalorder %s12_s9, 4  }
 0x28f   :  { %11 = sbr.rel (!%p9_p4) target bundleno = 1 (0x1), region = 60 }

// kernel: depthwise_conv2d_bn.4
= control target key start
LH: loop header
LB: loop body
LE: loop exit
PB: predicated region body
PF: predicated region fallthrough
CT: control target
= control target key end

     0   :  { %s849_s18 = smov 0   ;;  %s960_s0 = inlined_call_operand.vmem [shape: f32[2,4,256], index: 0, kind: input, shape index: {}]   ;;  %s961_s1 = inlined_call_operand.vmem [shape: f32[4,9], index: 1, kind: input, shape index: {}]   ;;  %s962_s2 = inlined_call_operand.vmem [shape: f32[4,1], index: 2, kind: input, shape index: {}]   ;;  %s963_s3 = inlined_call_operand.vmem [shape: f32[4,1], index: 3, kind: input, shape index: {}]   ;;  %s964_s4 = inlined_call_operand.vmem [shape: f32[8,4], index: 4, kind: input, shape index: {}]   ;;  %s965_s5 = inlined_call_operand.vmem [shape: f32[2,8,2], index: 5, kind: output, shape index: {}]  }
   0x1 LB: > { %s735_s19 = sadd.s32 4294967295, %s798_s18   ;;  %p739_p0 = scmp.ge.s32.totalorder %s798_s18, 1  ;;  %s798_s18 = sphi %s849_s18, %s15_s18  }
   0x2   : > { %p187_p1 = scmp.lt.s32.totalorder %s798_s18, 3 }
   0x4   : > { %p188_p2 = pnand %p739_p0, %p187_p1 }
   0x5   : > { %p214_p3 = scmp.lt.s32.totalorder (!%p188_p2), %s735_s19, 1  ;;  %s810_s26 = smov (!%p188_p2), 112  }
   0x6   : > { %191 = sbr.rel (%p188_p2) target bundleno = 667 (0x29b), region = 40  ;;  %s813_s27 = smov (!%p188_p2), 113  }
   0x7   : > { %s814_s28 = smov (!%p188_p2), 96   ;;  %s815_s29 = smov (!%p188_p2), 111  }
   0x8   : > { %s816_s30 = smov (!%p188_p2), 127   ;;  %s817_s8 = smov (!%p188_p2), 126  }
   0x9   : > { %s818_s13 = smov (!%p188_p2), 17  }
   0xb   : > { %v860_v0 = vld [vmem:[%s961_s1] sm:$0xf]  ;;  %v800_v1 = vmov 5   ;;  %v801_v2 = vmov 4   ;;  %v802_v3 = vmov 3   ;;  %v803_v4 = vmov 7  }
   0xc   : > { %779 = vset.pattern.permute.xlu1 %v800_v1  ;;  %777 = vset.pattern.permute.xlu0 %v801_v2  ;;  %v804_v5 = vmov 8   ;;  %v805_v6 = vmov 1   ;;  %v806_v7 = vmov 6   ;;  %s967_s19 = smov (!%p214_p3, %s735_s19), 1  ;;  %vm224_vm0 = vcmask 1043456  }
   0xd   : > { %463 = vperm.xlu1 %779, %v860_v0   ;;  %373 = vperm.xlu0 %777, %v860_v0   ;;  %vm225_vm1 = vcmask 138244   ;;  %s749_s22 = sshll.u32 %s967_s19, 3  ;;  %v807_v8 = vmov 0.0   ;;  %v808_v10 = vmov 2   ;;  %v809_v11 = vmov 1.0  }
   0xe   : > { %781 = vset.pattern.permute.xlu2 %v802_v3  ;;  %vm226_vm2 = vmor %vm225_vm1, %vm224_vm0  ;;  %223 = vst [vmem:[#allocation2] sm:$0xff] %v807_v8  ;;  %s218_s25 = scalar_lea.vmem %s960_s0, %s749_s22  ;;  %v415_v12 = vrot.slane %v809_v11, 4  ;;  %v230_v14 = vlaneseq  ;;  %v811_v17 = vmov 839922192   ;;  %v812_v21 = vmov 0   ;;  %s222_s16 = scalar_lea.vmem %s965_s5, %s749_s22 }
   0xf   : > { %284 = vperm.xlu2 %781, %v860_v0   ;;  %227 = vst.msk [vmem:[#allocation2 + $0x8] sm:$0xff] %vm226_vm2, %v807_v8  ;;  %v880_v9 = vld [vmem:[%s218_s25] sm:$0xff]  ;;  %v275_v18 = vunpack.c.l.s4 %v811_v17  ;;  %vm302_vm7 = vcmask 916480   ;;  %vm327_vm8 = vcmask 785408   ;;  %vm515_vm9 = vcmask 924672  }
  0x10   : > { %229 = vst [vmem:[#allocation2 + $0x4] sm:$0xff] %v880_v9  ;;  %v416_v13 = vsel %vm224_vm0, 1.0, %v415_v12  ;;  %v231_v15 = vand.u32 127, %v230_v14  ;;  %vm341_vm10 = vcmask 908288   ;;  %vm434_vm11 = vcmask 1039360  }
  0x11   : > { %v887_v20 = vunpack.c.0.s8 %v275_v18  ;;  %vm530_vm12 = vcmask 1031168   ;;  %vm651_vm13 = vcmask 138240   ;;  %vm659_vm14 = vcmask 7168  }
  0x12   : > { %v232_v16 = vadd.s32 128, %v231_v15  ;;  %v237_v25 = vand.u32 15, %v231_v15  ;;  %vm680_vm15 = vcmask 15368  }
  0x14   : > { %v244_v19 = vand.u32 15, %v232_v16  ;;  %vm442_vm4 = vcmp.lt.s32.totalorder %v237_v25, 15  ;;  %vm257_vm6 = vcmp.ge.s32.totalorder %v237_v25, 1 }
  0x15   : > { %778 = vset.pattern.permute.xlu0 %v803_v4  ;;  %780 = vset.pattern.permute.xlu1 %v804_v5  ;;  %v745_v33 = vsel %vm442_vm4, 1.0, %v807_v8  ;;  %v743_v43 = vsel %vm257_vm6, 1.0, %v807_v8 }
  0x16   : > { %391 = vperm.xlu0 %778, %v860_v0   ;;  %486 = vperm.xlu1 %780, %v860_v0   ;;  %v309_v23 = vld [vmem:[#allocation2 + $0xc] sm:$0xf]  ;;  %vm443_vm3 = vcmp.lt.s32.totalorder %v244_v19, 15  ;;  %vm258_vm5 = vcmp.ge.s32.totalorder %v244_v19, 1 }
  0x17   : > { %782 = vset.pattern.permute.xlu2 %v805_v6  ;;  %v746_v31 = vsel %vm443_vm3, 1.0, %v807_v8  ;;  %v744_v39 = vsel %vm258_vm5, 1.0, %v807_v8  ;;  %v900_v45 = vld [vmem:[#allocation2] sm:$0xff]  ;;  %v905_v51 = vld [vmem:[#allocation2 + $0x8] sm:$0xf] }
  0x18   : > { %360 = vperm.xlu2 %782, %v860_v0   ;;  %v510_v32 = vrot.slane %v746_v31, 4  ;;  %v336_v42 = vrot.slane %v744_v39, 4 }
  0x1a   : > { %v511_v38 = vsel %vm224_vm0, %v745_v33, %v510_v32  ;;  %v337_v47 = vsel %vm224_vm0, %v743_v43, %v336_v42  ;;  %v548_v42 = vld [vmem:[%s963_s3] sm:$0xf] }
  0x1b   : > { %v562_v43 = vld [vmem:[%s964_s4] sm:$0xff] }
  0x1e   : > { %784 = vset.pattern.permute.xlu0 %v806_v7  ;;  %785 = vset.pattern.permute.xlu1 %v812_v21 }
  0x1f   : > { %311 = vperm.xlu0 %784, %v860_v0  }
  0x20   : > { %783 = vset.pattern.permute.xlu2 %v808_v10 }
  0x21   : > { %451 = vperm.xlu2 %783, %v860_v0  }
  0x27   : > { %787 = vset.pattern.permute.xlu0 %v812_v21 }
  0x29   : > { %417 = vrot.lane.b32.xlu2 %v416_v13, %s810_s26 }
  0x2a   : > { %786 = vset.pattern.permute.xlu2 %v812_v21 }
  0x69   : > { %v285_v44 = vpop.permute.xlu2 %284 }
  0x6a   : > { %v289_v46 = vperm.slane %v285_v44, %v887_v20 }
  0x6c   : > { %v291_v48 = vmul.f32 %v289_v46, %v900_v45  ;;  %v292_v53 = vmul.f32 %v289_v46, %v905_v51 }
  0x72   : > { %v361_v57 = vpop.permute.xlu2 %360 }
  0x73   : > { %v365_v61 = vperm.slane %v361_v57, %v887_v20 }
  0x75   : > { %v367_v2 = vmul.f32 %v365_v61, %v900_v45  ;;  %v368_v11 = vmul.f32 %v365_v61, %v905_v51 }
  0x7b   : > { %v452_v58 = vpop.permute.xlu2 %451 }
  0x7c   : > { %v456_v18 = vperm.slane %v452_v58, %v887_v20 }
  0x7f   : > { %v464_v22 = vpop.permute.xlu1 %463  ;;  %v374_v24 = vpop.permute.xlu0 %373 }
  0x80   : > { %v468_v26 = vperm.slane %v464_v22, %v887_v20  ;;  %v378_v27 = vperm.slane %v374_v24, %v887_v20  ;;  %v459_v24 = vmul.f32 %v456_v18, %v905_v51 }
  0x82   : > { %v470_v28 = vmul.f32 %v468_v26, %v880_v9  ;;  %v471_v29 = vmul.f32 %v468_v26, %v309_v23  ;;  %v380_v30 = vmul.f32 %v378_v27, %v880_v9 }
  0x83   : > { %v418_v62 = vpop.permute.xlu2 %417 }
  0x84   : > { %476 = vrot.lane.b32.xlu0 %v471_v29, %s810_s26  ;;  %382 = vrot.lane.b32.xlu1 %v380_v30, %s810_s26  ;;  %v419_v63 = vrot.slane %v418_v62, 4 }
  0x85   : > { %474 = vrot.lane.b32.xlu2 %v470_v28, %s810_s26 }
  0x86   : > { %v420_v7 = vsel %vm302_vm7, %v419_v63, %v418_v62 }
  0x88   : > { %v392_v34 = vpop.permute.xlu0 %391  ;;  %v487_v35 = vpop.permute.xlu1 %486 }
  0x89   : > { %v396_v36 = vperm.slane %v392_v34, %v887_v20  ;;  %v491_v37 = vperm.slane %v487_v35, %v887_v20 }
  0x8b   : > { %v398_v40 = vmul.f32 %v396_v36, %v880_v9  ;;  %v494_v41 = vmul.f32 %v491_v37, %v309_v23  ;;  %v399_v49 = vmul.f32 %v396_v36, %v309_v23  ;;  %v493_v54 = vmul.f32 %v491_v37, %v880_v9  ;;  %v536_v36 = vld [vmem:[%s962_s2] sm:$0xf] }
  0x8c   : > { %512 = vrot.lane.b32.xlu0 %v511_v38, %s813_s27 }
  0x8d   : > { %402 = vrot.lane.b32.xlu1 %v398_v40, %s814_s28  ;;  %499 = vrot.lane.b32.xlu2 %v494_v41, %s814_s28 }
  0x91   : > { %v312_v50 = vpop.permute.xlu0 %311 }
  0x92   : > { %v316_v52 = vperm.slane %v312_v50, %v887_v20 }
  0x94   : > { %338 = vrot.lane.b32.xlu0 %v337_v47, %s815_s29  ;;  %v319_v55 = vmul.f32 %v316_v52, %v309_v23  ;;  %v318_v56 = vmul.f32 %v316_v52, %v880_v9  ;;  %v458_v23 = vmul.f32 %v456_v18, %v900_v45 }
  0x95   : > { %404 = vrot.lane.b32.xlu1 %v399_v49, %s814_s28  ;;  %295 = vrot.lane.b32.xlu2 %v291_v48, %s810_s26 }
  0x9c   : > { %297 = vrot.lane.b32.xlu0 %v292_v53, %s810_s26 }
  0x9d   : > { %497 = vrot.lane.b32.xlu1 %v493_v54, %s814_s28  ;;  %324 = vrot.lane.b32.xlu2 %v319_v55, %s814_s28 }
  0xa5   : > { %272 = vperm.xlu1 %785, %v860_v0  }
  0xad   : > { %322 = vrot.lane.b32.xlu1 %v318_v56, %s814_s28 }
  0xdf   : > { %v475_v14 = vpop.permute.xlu2 %474 }
  0xe0   : > { %v478_v21 = vrot.slane %v475_v14, 4 }
  0xe2   : > { %v479_v26 = vsel %vm302_vm7, %v478_v21, %v475_v14 }
  0xe3   : > { %v483_v31 = vadd.f32 %v479_v26, %v458_v23 }
  0xe7   : > { %v500_v33 = vpop.permute.xlu2 %499 }
  0xef   : > { %v296_v47 = vpop.permute.xlu2 %295 }
  0xf0   : > { %v299_v53 = vrot.slane %v296_v47, 4 }
  0xf6   : > { %v383_v59 = vpop.permute.xlu1 %382  ;;  %v477_v12 = vpop.permute.xlu0 %476 }
  0xf7   : > { %v384_v60 = vrot.slane %v383_v59, 4  ;;  %v480_v27 = vsel %vm302_vm7, %v478_v21, %v477_v12  ;;  %v325_v50 = vpop.permute.xlu2 %324 }
  0xf8   : > { %v484_v32 = vadd.f32 %v480_v27, %v459_v24 }
  0xf9   : > { %v385_v1 = vsel %vm302_vm7, %v384_v60, %v383_v59  ;;  %v389_v15 = vadd.f32 %v384_v60, %v368_v11 }
  0xfa   : > { %v388_v0 = vadd.f32 %v385_v1, %v367_v2 }
  0xfe   : > { %v513_v25 = vpop.permute.xlu0 %512 }
  0xff   : > { %v403_v4 = vpop.permute.xlu1 %402  ;;  %v514_v29 = vrot.slane %v513_v25, 4 }
 0x100   : > { %v406_v5 = vrot.slane %v403_v4, 4 }
 0x101   : > { %v516_v39 = vsel %vm515_vm9, %v514_v29, %v513_v25 }
 0x102   : > { %v407_v8 = vsel %vm327_vm8, %v406_v5, %v403_v4 }
 0x103   : > { %v411_v9 = vadd.f32 %v407_v8, %v388_v0 }
 0x105   : > { %v423_v13 = vmul.f32 %v420_v7, %v411_v9 }
 0x106   : > { %v339_v44 = vpop.permute.xlu0 %338 }
 0x107   : > { %v405_v16 = vpop.permute.xlu1 %404  ;;  %427 = vrot.lane.b32.xlu1 %v423_v13, %s816_s30 }
 0x108   : > { %v408_v17 = vsel %vm327_vm8, %v406_v5, %v405_v16 }
 0x109   : > { %v412_v19 = vadd.f32 %v408_v17, %v389_v15 }
 0x10b   : > { %v424_v22 = vmul.f32 %v419_v63, %v412_v19  ;;  %v340_v63 = vrot.slane %v339_v44, 4 }
 0x10d   : > { %429 = vrot.lane.b32.xlu2 %v424_v22, %s816_s30 }
 0x10e   : > { %v298_v48 = vpop.permute.xlu0 %297 }
 0x10f   : > { %v498_v28 = vpop.permute.xlu1 %497  ;;  %v300_v52 = vrot.slane %v298_v48, 4 }
 0x110   : > { %v501_v30 = vrot.slane %v498_v28, 4 }
 0x111   : > { %v301_v54 = vsel %vm224_vm0, %v299_v53, %v300_v52 }
 0x112   : > { %v502_v34 = vsel %vm327_vm8, %v501_v30, %v498_v28  ;;  %v503_v35 = vsel %vm327_vm8, %v501_v30, %v500_v33  ;;  %v303_v56 = vsel %vm302_vm7, %v296_v47, %v301_v54 }
 0x113   : > { %v506_v37 = vadd.f32 %v502_v34, %v483_v31  ;;  %v507_v38 = vadd.f32 %v503_v35, %v484_v32 }
 0x115   : > { %v519_v40 = vmul.f32 %v516_v39, %v506_v37  ;;  %v520_v41 = vmul.f32 %v514_v29, %v507_v38  ;;  %539 = vperm.xlu2 %786, %v536_v36  }
 0x117   : > { %523 = vrot.lane.b32.xlu0 %v519_v40, %s817_s8  ;;  %525 = vrot.lane.b32.xlu1 %v520_v41, %s817_s8  ;;  %v273_v46 = vpop.permute.xlu1 %272 }
 0x11d   : > { %788 = vset.pattern.permute.xlu2 %v805_v6  ;;  %v277_v6 = vperm.slane %v273_v46, %v887_v20 }
 0x11e   : > { %586 = vperm.xlu2 %788, %v562_v43  }
 0x11f   : > { %551 = vperm.xlu0 %787, %v548_v42   ;;  %565 = vperm.xlu1 %785, %v562_v43   ;;  %v323_v49 = vpop.permute.xlu1 %322  ;;  %v280_v55 = vmul.f32 %v277_v6, %v905_v51  ;;  %v342_v51 = vsel %vm341_vm10, %v340_v63, %v339_v44 }
 0x120   : > { %v326_v57 = vrot.slane %v323_v49, 4 }
 0x121   : > { %v307_v58 = vadd.f32 %v298_v48, %v280_v55 }
 0x122   : > { %v329_v61 = vsel %vm327_vm8, %v326_v57, %v325_v50  ;;  %v328_v1 = vsel %vm327_vm8, %v326_v57, %v323_v49 }
 0x123   : > { %v333_v4 = vadd.f32 %v329_v61, %v307_v58 }
 0x125   : > { %v346_v0 = vmul.f32 %v340_v63, %v333_v4 }
 0x126   : > { %790 = vset.pattern.permute.xlu2 %v802_v3 }
 0x127   : > { %789 = vset.pattern.permute.xlu1 %v808_v10  ;;  %624 = vperm.xlu2 %790, %v562_v43   ;;  %v279_v10 = vmul.f32 %v277_v6, %v900_v45 }
 0x128   : > { %605 = vperm.xlu1 %789, %v562_v43   ;;  %791 = vset.pattern.permute.xlu0 %v802_v3 }
 0x129   : > { %v306_v60 = vadd.f32 %v303_v56, %v279_v10 }
 0x12b   : > { %v332_v5 = vadd.f32 %v328_v1, %v306_v60 }
 0x12d   : > { %v345_v11 = vmul.f32 %v342_v51, %v332_v5 }
 0x167   : > { %v430_v59 = vpop.permute.xlu2 %429 }
 0x168   : > { %v432_v2 = vrot.slane %v430_v59, 4  ;;  %v439_v15 = vadd.f32 %v430_v59, %v346_v0 }
 0x16f   : > { %v540_v14 = vpop.permute.xlu2 %539 }
 0x170   : > { %v544_v22 = vperm.slane %v540_v14, %v887_v20 }
 0x178   : > { %v587_v30 = vpop.permute.xlu2 %586 }
 0x179   : > { %v428_v3 = vpop.permute.xlu1 %427 }
 0x17a   : > { %v431_v62 = vrot.slane %v428_v3, 4 }
 0x17c   : > { %v433_v45 = vsel %vm224_vm0, %v431_v62, %v432_v2 }
 0x17d   : > { %v435_v7 = vsel %vm434_vm11, %v428_v3, %v433_v45 }
 0x17e   : > { %v438_v16 = vadd.f32 %v435_v7, %v345_v11 }
 0x181   : > { %v625_v63 = vpop.permute.xlu2 %624 }
 0x189   : > { %v524_v8 = vpop.permute.xlu0 %523  ;;  %v526_v9 = vpop.permute.xlu1 %525 }
 0x18a   : > { %v527_v12 = vrot.slane %v524_v8, 4  ;;  %v528_v13 = vrot.slane %v526_v9, 4  ;;  %v535_v19 = vadd.f32 %v526_v9, %v439_v15 }
 0x18c   : > { %v529_v17 = vsel %vm224_vm0, %v527_v12, %v528_v13  ;;  %v547_v25 = vmul.f32 %v544_v22, %v535_v19 }
 0x18d   : > { %v531_v18 = vsel %vm530_vm12, %v524_v8, %v529_v17 }
 0x18e   : > { %v534_v21 = vadd.f32 %v531_v18, %v438_v16 }
 0x190   : > { %v546_v24 = vmul.f32 %v544_v22, %v534_v21 }
 0x191   : > { %v552_v23 = vpop.permute.xlu0 %551  ;;  %v566_v29 = vpop.permute.xlu1 %565 }
 0x192   : > { %v556_v26 = vperm.slane %v552_v23, %v887_v20 }
 0x194   : > { %v558_v27 = vadd.f32 %v556_v26, %v546_v24  ;;  %v559_v28 = vadd.f32 %v556_v26, %v547_v25 }
 0x196   : > { %v560_v31 = vmax.f32 %v558_v27, 0.0  ;;  %v561_v32 = vmax.f32 %v559_v28, 0.0 }
 0x198   : > { %v570_v33 = vperm.slane %v560_v31, 0  ;;  %v571_v34 = vperm.slane %v560_v31, 4  ;;  %v572_v35 = vperm.slane %v561_v32, 0  ;;  %v591_v36 = vperm.slane %v561_v32, 1 }
 0x199   : > { %v589_v37 = vperm.slane %v560_v31, 1  ;;  %v590_v38 = vperm.slane %v560_v31, 5  ;;  %v608_v39 = vperm.slane %v560_v31, 2  ;;  %v609_v40 = vperm.slane %v560_v31, 6 }
 0x19a   : > { %v576_v41 = vperm.slane %v570_v33, 0  ;;  %v577_v42 = vperm.slane %v571_v34, 0  ;;  %v578_v43 = vperm.slane %v572_v35, 0  ;;  %v597_v44 = vperm.slane %v591_v36, 1  ;;  %v606_v6 = vpop.permute.xlu1 %605 }
 0x19b   : > { %v595_v46 = vperm.slane %v589_v37, 1  ;;  %v596_v20 = vperm.slane %v590_v38, 1  ;;  %v610_v47 = vperm.slane %v561_v32, 2  ;;  %v614_v48 = vperm.slane %v608_v39, 2 }
 0x19c   : > { %v579_v49 = vmul.f32 %v576_v41, %v566_v29  ;;  %v580_v50 = vmul.f32 %v577_v42, %v566_v29  ;;  %v581_v52 = vmul.f32 %v578_v43, %v566_v29  ;;  %v600_v53 = vmul.f32 %v597_v44, %v587_v30 }
 0x19d   : > { %v598_v54 = vmul.f32 %v595_v46, %v587_v30  ;;  %v599_v55 = vmul.f32 %v596_v20, %v587_v30  ;;  %v615_v10 = vperm.slane %v609_v40, 2  ;;  %v616_v56 = vperm.slane %v610_v47, 2 }
 0x19e   : > { %v603_v57 = vadd.f32 %v600_v53, %v581_v52  ;;  %v629_v3 = vperm.slane %v561_v32, 3  ;;  %v627_v58 = vperm.slane %v560_v31, 3  ;;  %v617_v61 = vmul.f32 %v614_v48, %v606_v6 }
 0x19f   : > { %v601_v59 = vadd.f32 %v598_v54, %v579_v49  ;;  %v602_v60 = vadd.f32 %v599_v55, %v580_v50  ;;  %v619_v62 = vmul.f32 %v616_v56, %v606_v6  ;;  %v618_v1 = vmul.f32 %v615_v10, %v606_v6 }
 0x1a0   : > { %v635_v2 = vperm.slane %v629_v3, 3  ;;  %v628_v4 = vperm.slane %v560_v31, 7  ;;  %v633_v5 = vperm.slane %v627_v58, 3 }
 0x1a1   : > { %v620_v45 = vadd.f32 %v617_v61, %v601_v59  ;;  %v622_v51 = vadd.f32 %v619_v62, %v603_v57  ;;  %v621_v0 = vadd.f32 %v618_v1, %v602_v60 }
 0x1a2   : > { %v634_v7 = vperm.slane %v628_v4, 3  ;;  %v636_v8 = vmul.f32 %v633_v5, %v625_v63  ;;  %v638_v9 = vmul.f32 %v635_v2, %v625_v63 }
 0x1a4   : > { %v637_v11 = vmul.f32 %v634_v7, %v625_v63  ;;  %v641_v12 = vadd.f32 %v638_v9, %v622_v51  ;;  %v639_v13 = vadd.f32 %v636_v8, %v620_v45 }
 0x1a6   : > { %649 = vrot.lane.b32.xlu2 %v641_v12, %s818_s13  ;;  %v640_v14 = vadd.f32 %v637_v11, %v621_v0  ;;  %645 = vrot.lane.b32.xlu0 %v639_v13, %s818_s13  ;;  %v663_v15 = vmul.f32 %v641_v12, %v641_v12  ;;  %v661_v16 = vmul.f32 %v639_v13, %v639_v13 }
 0x1a8   : > { %647 = vrot.lane.b32.xlu1 %v640_v14, %s818_s13  ;;  %v662_v17 = vmul.f32 %v640_v14, %v640_v14 }
 0x1ae   : > { %671 = vrot.lane.b32.xlu2 %v663_v15, %s818_s13  ;;  %667 = vrot.lane.b32.xlu0 %v661_v16, %s818_s13 }
 0x1b0   : > { %669 = vrot.lane.b32.xlu1 %v662_v17, %s818_s13 }
 0x200   : > { %v650_v18 = vpop.permute.xlu2 %649 }
 0x208   : > { %v672_v26 = vpop.permute.xlu2 %671 }
 0x218   : > { %v646_v19 = vpop.permute.xlu0 %645 }
 0x21a   : > { %v648_v21 = vpop.permute.xlu1 %647 }
 0x21b   : > { %v653_v22 = vsel %vm651_vm13, %v648_v21, %v650_v18  ;;  %v652_v23 = vsel %vm651_vm13, %v646_v19, %v648_v21 }
 0x21c   : > { %v656_v24 = vadd.f32 %v653_v22, %v652_v23 }
 0x21e   : > { %657 = vadd.xlane.f32.xlu0 %v656_v24 }
 0x220   : > { %v668_v25 = vpop.permute.xlu0 %667 }
 0x222   : > { %v670_v27 = vpop.permute.xlu1 %669 }
 0x223   : > { %v674_v28 = vsel %vm651_vm13, %v670_v27, %v672_v26  ;;  %v673_v29 = vsel %vm651_vm13, %v668_v25, %v670_v27 }
 0x224   : > { %v677_v30 = vadd.f32 %v674_v28, %v673_v29 }
 0x226   : > { %678 = vadd.xlane.f32.xlu1 %v677_v30 }
 0x291   : > { %v658_v31 = vpop.xlane.xlu0 %657 }
 0x292   : > { %660 = vst.msk [vmem:[%s222_s16] sm:$0xff] %vm659_vm14, %v658_v31 }
 0x299   : > { %v679_v32 = vpop.xlane.xlu1 %678 }
 0x29a   : > { %681 = vst.msk [vmem:[%s222_s16] sm:$0xff] %vm680_vm15, %v679_v32 }
 0x29b PF: > { %s15_s18 = sadd.s32 1, %s798_s18  }
 0x29c   : > { %p12_p4 = scmp.ge.s32.totalorder %s15_s18, 4  }
 0x29e   :  { %14 = sbr.rel (!%p12_p4) target bundleno = 1 (0x1), region = 70 }

// kernel: depthwise_conv2d_bn.5
= control target key start
LH: loop header
LB: loop body
LE: loop exit
PB: predicated region body
PF: predicated region fallthrough
CT: control target
= control target key end

     0   :  { %s916_s24 = smov 0   ;;  %s1033_s0 = inlined_call_operand.vmem [shape: f32[2,4,256], index: 0, kind: input, shape index: {}]   ;;  %s1034_s1 = inlined_call_operand.vmem [shape: f32[4,9], index: 1, kind: input, shape index: {}]   ;;  %s1035_s2 = inlined_call_operand.vmem [shape: f32[4,1], index: 2, kind: input, shape index: {}]   ;;  %s1036_s3 = inlined_call_operand.vmem [shape: f32[4,1], index: 3, kind: input, shape index: {}]   ;;  %s1037_s4 = inlined_call_operand.vmem [shape: f32[8,4], index: 4, kind: input, shape index: {}]   ;;  %s1038_s5 = inlined_call_operand.vmem [shape: f32[8,1], index: 5, kind: input, shape index: {}]   ;;  %s1039_s6 = inlined_call_operand.vmem [shape: f32[8,1], index: 6, kind: input, shape index: {}]   ;;  %s1040_s7 = inlined_call_operand.vmem [shape: f32[2,8,256], index: 7, kind: output, shape index: {}]  }
   0x1 LB: > { %s790_s25 = sadd.s32 4294967295, %s855_s24   ;;  %p794_p0 = scmp.ge.s32.totalorder %s855_s24, 1  ;;  %s855_s24 = sphi %s916_s24, %s17_s24  }
   0x2   : > { %p237_p1 = scmp.lt.s32.totalorder %s855_s24, 3 }
   0x4   : > { %p238_p2 = pnand %p794_p0, %p237_p1 }
   0x5   : > { %p269_p3 = scmp.lt.s32.totalorder (!%p238_p2), %s790_s25, 1  ;;  %s867_s9 = smov (!%p238_p2), 112  }
   0x6   : > { %241 = sbr.rel (%p238_p2) target bundleno = 548 (0x224), region = 48  ;;  %s870_s10 = smov (!%p238_p2), 113  }
   0x7   : > { %s871_s11 = smov (!%p238_p2), 96   ;;  %s872_s12 = smov (!%p238_p2), 111  }
   0x8   : > { %s873_s13 = smov (!%p238_p2), 127   ;;  %s874_s16 = smov (!%p238_p2), 126  }
   0x9   : > { %s875_s27 = smov (!%p238_p2), 17  }
   0xb   : > { %v927_v0 = vld [vmem:[%s1034_s1] sm:$0xf]  ;;  %v857_v1 = vmov 5   ;;  %v858_v2 = vmov 4   ;;  %v859_v3 = vmov 3   ;;  %v860_v4 = vmov 7  }
   0xc   : > { %836 = vset.pattern.permute.xlu1 %v857_v1  ;;  %834 = vset.pattern.permute.xlu0 %v858_v2  ;;  %v861_v5 = vmov 8   ;;  %v862_v6 = vmov 1   ;;  %v863_v7 = vmov 6   ;;  %s1042_s25 = smov (!%p269_p3, %s790_s25), 1  ;;  %vm280_vm0 = vcmask 1043456  }
   0xd   : > { %519 = vperm.xlu1 %836, %v927_v0   ;;  %429 = vperm.xlu0 %834, %v927_v0   ;;  %vm281_vm1 = vcmask 138244   ;;  %s805_s28 = sshll.u32 %s1042_s25, 3  ;;  %v864_v8 = vmov 0.0   ;;  %v865_v10 = vmov 2   ;;  %v866_v11 = vmov 1.0  }
   0xe   : > { %838 = vset.pattern.permute.xlu2 %v859_v3  ;;  %vm282_vm2 = vmor %vm281_vm1, %vm280_vm0  ;;  %279 = vst [vmem:[#allocation2] sm:$0xff] %v864_v8  ;;  %s273_s8 = scalar_lea.vmem %s1033_s0, %s805_s28  ;;  %v471_v12 = vrot.slane %v866_v11, 4  ;;  %v286_v14 = vlaneseq  ;;  %v868_v17 = vmov 839922192   ;;  %v869_v21 = vmov 0   ;;  %s806_s28 = sshll.u32 %s1042_s25, 4 }
   0xf   : > { %340 = vperm.xlu2 %838, %v927_v0   ;;  %283 = vst.msk [vmem:[#allocation2 + $0x8] sm:$0xff] %vm282_vm2, %v864_v8  ;;  %v945_v9 = vld [vmem:[%s273_s8] sm:$0xff]  ;;  %v331_v18 = vunpack.c.l.s4 %v868_v17  ;;  %vm358_vm7 = vcmask 916480   ;;  %vm383_vm8 = vcmask 785408   ;;  %vm571_vm9 = vcmask 924672   ;;  %s278_s8 = scalar_lea.vmem %s1040_s7, %s806_s28 }
  0x10   : > { %285 = vst [vmem:[#allocation2 + $0x4] sm:$0xff] %v945_v9  ;;  %v472_v13 = vsel %vm280_vm0, 1.0, %v471_v12  ;;  %v287_v15 = vand.u32 127, %v286_v14  ;;  %vm397_vm10 = vcmask 908288   ;;  %vm490_vm11 = vcmask 1039360  }
  0x11   : > { %v952_v20 = vunpack.c.0.s8 %v331_v18  ;;  %vm586_vm12 = vcmask 1031168   ;;  %vm728_vm13 = vcmask 138240  }
  0x12   : > { %v288_v16 = vadd.s32 128, %v287_v15  ;;  %v293_v25 = vand.u32 15, %v287_v15 }
  0x14   : > { %v300_v19 = vand.u32 15, %v288_v16  ;;  %vm498_vm4 = vcmp.lt.s32.totalorder %v293_v25, 15  ;;  %vm313_vm6 = vcmp.ge.s32.totalorder %v293_v25, 1 }
  0x15   : > { %835 = vset.pattern.permute.xlu0 %v860_v4  ;;  %837 = vset.pattern.permute.xlu1 %v861_v5  ;;  %v801_v33 = vsel %vm498_vm4, 1.0, %v864_v8  ;;  %v799_v43 = vsel %vm313_vm6, 1.0, %v864_v8 }
  0x16   : > { %447 = vperm.xlu0 %835, %v927_v0   ;;  %542 = vperm.xlu1 %837, %v927_v0   ;;  %v365_v23 = vld [vmem:[#allocation2 + $0xc] sm:$0xf]  ;;  %vm499_vm3 = vcmp.lt.s32.totalorder %v300_v19, 15  ;;  %vm314_vm5 = vcmp.ge.s32.totalorder %v300_v19, 1 }
  0x17   : > { %839 = vset.pattern.permute.xlu2 %v862_v6  ;;  %v802_v31 = vsel %vm499_vm3, 1.0, %v864_v8  ;;  %v800_v39 = vsel %vm314_vm5, 1.0, %v864_v8  ;;  %v968_v45 = vld [vmem:[#allocation2] sm:$0xff]  ;;  %v973_v51 = vld [vmem:[#allocation2 + $0x8] sm:$0xf] }
  0x18   : > { %416 = vperm.xlu2 %839, %v927_v0   ;;  %v566_v32 = vrot.slane %v802_v31, 4  ;;  %v392_v42 = vrot.slane %v800_v39, 4 }
  0x1a   : > { %v567_v38 = vsel %vm280_vm0, %v801_v33, %v566_v32  ;;  %v393_v47 = vsel %vm280_vm0, %v799_v43, %v392_v42  ;;  %v604_v43 = vld [vmem:[%s1036_s3] sm:$0xf] }
  0x1e   : > { %841 = vset.pattern.permute.xlu0 %v863_v7  ;;  %842 = vset.pattern.permute.xlu1 %v869_v21 }
  0x1f   : > { %367 = vperm.xlu0 %841, %v927_v0  }
  0x20   : > { %840 = vset.pattern.permute.xlu2 %v865_v10 }
  0x21   : > { %507 = vperm.xlu2 %840, %v927_v0  }
  0x27   : > { %844 = vset.pattern.permute.xlu0 %v869_v21 }
  0x29   : > { %473 = vrot.lane.b32.xlu2 %v472_v13, %s867_s9 }
  0x2a   : > { %843 = vset.pattern.permute.xlu2 %v869_v21 }
  0x69   : > { %v341_v44 = vpop.permute.xlu2 %340 }
  0x6a   : > { %v345_v46 = vperm.slane %v341_v44, %v952_v20  ;;  %v618_v44 = vld [vmem:[%s1037_s4] sm:$0xff] }
  0x6c   : > { %v347_v48 = vmul.f32 %v345_v46, %v968_v45  ;;  %v348_v53 = vmul.f32 %v345_v46, %v973_v51  ;;  %v698_v46 = vld [vmem:[%s1038_s5] sm:$0xff] }
  0x72   : > { %v417_v57 = vpop.permute.xlu2 %416 }
  0x73   : > { %v421_v61 = vperm.slane %v417_v57, %v952_v20 }
  0x75   : > { %v423_v2 = vmul.f32 %v421_v61, %v968_v45  ;;  %v424_v11 = vmul.f32 %v421_v61, %v973_v51 }
  0x7b   : > { %v508_v58 = vpop.permute.xlu2 %507 }
  0x7c   : > { %v512_v18 = vperm.slane %v508_v58, %v952_v20 }
  0x7e   : > { %v515_v25 = vmul.f32 %v512_v18, %v973_v51 }
  0x7f   : > { %v520_v22 = vpop.permute.xlu1 %519  ;;  %v430_v24 = vpop.permute.xlu0 %429 }
  0x80   : > { %v524_v26 = vperm.slane %v520_v22, %v952_v20  ;;  %v434_v27 = vperm.slane %v430_v24, %v952_v20  ;;  %v514_v24 = vmul.f32 %v512_v18, %v968_v45 }
  0x82   : > { %v526_v28 = vmul.f32 %v524_v26, %v945_v9  ;;  %v527_v29 = vmul.f32 %v524_v26, %v365_v23  ;;  %v436_v30 = vmul.f32 %v434_v27, %v945_v9 }
  0x83   : > { %v474_v62 = vpop.permute.xlu2 %473 }
  0x84   : > { %532 = vrot.lane.b32.xlu0 %v527_v29, %s867_s9  ;;  %438 = vrot.lane.b32.xlu1 %v436_v30, %s867_s9  ;;  %v475_v63 = vrot.slane %v474_v62, 4 }
  0x85   : > { %530 = vrot.lane.b32.xlu2 %v526_v28, %s867_s9 }
  0x86   : > { %v476_v7 = vsel %vm358_vm7, %v475_v63, %v474_v62 }
  0x88   : > { %v448_v34 = vpop.permute.xlu0 %447  ;;  %v543_v35 = vpop.permute.xlu1 %542 }
  0x89   : > { %v452_v36 = vperm.slane %v448_v34, %v952_v20  ;;  %v547_v37 = vperm.slane %v543_v35, %v952_v20 }
  0x8b   : > { %v454_v40 = vmul.f32 %v452_v36, %v945_v9  ;;  %v550_v41 = vmul.f32 %v547_v37, %v365_v23  ;;  %v455_v49 = vmul.f32 %v452_v36, %v365_v23  ;;  %v549_v54 = vmul.f32 %v547_v37, %v945_v9  ;;  %v592_v37 = vld [vmem:[%s1035_s2] sm:$0xf] }
  0x8c   : > { %568 = vrot.lane.b32.xlu0 %v567_v38, %s870_s10 }
  0x8d   : > { %458 = vrot.lane.b32.xlu1 %v454_v40, %s871_s11  ;;  %555 = vrot.lane.b32.xlu2 %v550_v41, %s871_s11 }
  0x91   : > { %v368_v50 = vpop.permute.xlu0 %367 }
  0x92   : > { %v372_v52 = vperm.slane %v368_v50, %v952_v20 }
  0x94   : > { %394 = vrot.lane.b32.xlu0 %v393_v47, %s872_s12  ;;  %v375_v55 = vmul.f32 %v372_v52, %v365_v23  ;;  %v374_v56 = vmul.f32 %v372_v52, %v945_v9  ;;  %v707_v47 = vld [vmem:[%s1039_s6] sm:$0xff] }
  0x95   : > { %460 = vrot.lane.b32.xlu1 %v455_v49, %s871_s11  ;;  %351 = vrot.lane.b32.xlu2 %v347_v48, %s867_s9 }
  0x9c   : > { %353 = vrot.lane.b32.xlu0 %v348_v53, %s867_s9 }
  0x9d   : > { %553 = vrot.lane.b32.xlu1 %v549_v54, %s871_s11  ;;  %380 = vrot.lane.b32.xlu2 %v375_v55, %s871_s11 }
  0xa5   : > { %328 = vperm.xlu1 %842, %v927_v0  }
  0xad   : > { %378 = vrot.lane.b32.xlu1 %v374_v56, %s871_s11 }
  0xdf   : > { %v531_v14 = vpop.permute.xlu2 %530 }
  0xe0   : > { %v534_v22 = vrot.slane %v531_v14, 4 }
  0xe2   : > { %v535_v27 = vsel %vm358_vm7, %v534_v22, %v531_v14 }
  0xe3   : > { %v539_v32 = vadd.f32 %v535_v27, %v514_v24 }
  0xe7   : > { %v556_v34 = vpop.permute.xlu2 %555 }
  0xef   : > { %v352_v49 = vpop.permute.xlu2 %351 }
  0xf6   : > { %v439_v59 = vpop.permute.xlu1 %438  ;;  %v533_v12 = vpop.permute.xlu0 %532 }
  0xf7   : > { %v440_v60 = vrot.slane %v439_v59, 4  ;;  %v536_v28 = vsel %vm358_vm7, %v534_v22, %v533_v12  ;;  %v381_v53 = vpop.permute.xlu2 %380 }
  0xf8   : > { %v540_v33 = vadd.f32 %v536_v28, %v515_v25 }
  0xf9   : > { %v441_v1 = vsel %vm358_vm7, %v440_v60, %v439_v59  ;;  %v445_v15 = vadd.f32 %v440_v60, %v424_v11 }
  0xfa   : > { %v444_v0 = vadd.f32 %v441_v1, %v423_v2 }
  0xfe   : > { %v569_v26 = vpop.permute.xlu0 %568 }
  0xff   : > { %v459_v4 = vpop.permute.xlu1 %458  ;;  %v570_v30 = vrot.slane %v569_v26, 4 }
 0x100   : > { %v462_v5 = vrot.slane %v459_v4, 4 }
 0x101   : > { %v572_v40 = vsel %vm571_vm9, %v570_v30, %v569_v26 }
 0x102   : > { %v463_v8 = vsel %vm383_vm8, %v462_v5, %v459_v4 }
 0x103   : > { %v467_v9 = vadd.f32 %v463_v8, %v444_v0 }
 0x105   : > { %v479_v13 = vmul.f32 %v476_v7, %v467_v9 }
 0x107   : > { %v461_v16 = vpop.permute.xlu1 %460  ;;  %483 = vrot.lane.b32.xlu1 %v479_v13, %s873_s13 }
 0x108   : > { %v464_v17 = vsel %vm383_vm8, %v462_v5, %v461_v16 }
 0x109   : > { %v468_v19 = vadd.f32 %v464_v17, %v445_v15 }
 0x10b   : > { %v480_v23 = vmul.f32 %v475_v63, %v468_v19 }
 0x10d   : > { %485 = vrot.lane.b32.xlu2 %v480_v23, %s873_s13 }
 0x10f   : > { %v554_v29 = vpop.permute.xlu1 %553 }
 0x110   : > { %v557_v31 = vrot.slane %v554_v29, 4 }
 0x112   : > { %v558_v35 = vsel %vm383_vm8, %v557_v31, %v554_v29  ;;  %v559_v36 = vsel %vm383_vm8, %v557_v31, %v556_v34 }
 0x113   : > { %v562_v38 = vadd.f32 %v558_v35, %v539_v32  ;;  %v563_v39 = vadd.f32 %v559_v36, %v540_v33 }
 0x115   : > { %v575_v41 = vmul.f32 %v572_v40, %v562_v38  ;;  %v576_v42 = vmul.f32 %v570_v30, %v563_v39  ;;  %595 = vperm.xlu2 %843, %v592_v37  }
 0x117   : > { %579 = vrot.lane.b32.xlu0 %v575_v41, %s874_s16  ;;  %581 = vrot.lane.b32.xlu1 %v576_v42, %s874_s16  ;;  %v329_v48 = vpop.permute.xlu1 %328 }
 0x118   : > { %v333_v55 = vperm.slane %v329_v48, %v952_v20 }
 0x11a   : > { %v336_v56 = vmul.f32 %v333_v55, %v973_v51  ;;  %v335_v57 = vmul.f32 %v333_v55, %v968_v45 }
 0x11d   : > { %845 = vset.pattern.permute.xlu2 %v862_v6  ;;  %v395_v6 = vpop.permute.xlu0 %394 }
 0x11e   : > { %642 = vperm.xlu2 %845, %v618_v44   ;;  %v396_v2 = vrot.slane %v395_v6, 4 }
 0x11f   : > { %607 = vperm.xlu0 %844, %v604_v43   ;;  %621 = vperm.xlu1 %842, %v618_v44   ;;  %v379_v52 = vpop.permute.xlu1 %378 }
 0x120   : > { %v398_v51 = vsel %vm397_vm10, %v396_v2, %v395_v6 }
 0x125   : > { %v354_v50 = vpop.permute.xlu0 %353 }
 0x126   : > { %847 = vset.pattern.permute.xlu2 %v859_v3  ;;  %v356_v54 = vrot.slane %v354_v50, 4  ;;  %v355_v3 = vrot.slane %v352_v49, 4  ;;  %v363_v60 = vadd.f32 %v354_v50, %v336_v56 }
 0x127   : > { %701 = vperm.xlu0 %844, %v698_v46   ;;  %846 = vset.pattern.permute.xlu1 %v865_v10 }
 0x128   : > { %661 = vperm.xlu1 %846, %v618_v44   ;;  %680 = vperm.xlu2 %847, %v618_v44   ;;  %v357_v10 = vsel %vm280_vm0, %v355_v3, %v356_v54 }
 0x129   : > { %v359_v58 = vsel %vm358_vm7, %v352_v49, %v357_v10 }
 0x12a   : > { %v362_v62 = vadd.f32 %v359_v58, %v335_v57 }
 0x130   : > { %848 = vset.pattern.permute.xlu1 %v869_v21  ;;  %v382_v21 = vrot.slane %v379_v52, 4 }
 0x131   : > { %710 = vperm.xlu1 %848, %v707_v47  }
 0x132   : > { %v385_v63 = vsel %vm383_vm8, %v382_v21, %v381_v53  ;;  %v384_v4 = vsel %vm383_vm8, %v382_v21, %v379_v52 }
 0x133   : > { %v389_v0 = vadd.f32 %v385_v63, %v363_v60  ;;  %v388_v7 = vadd.f32 %v384_v4, %v362_v62 }
 0x135   : > { %v402_v8 = vmul.f32 %v396_v2, %v389_v0  ;;  %v401_v13 = vmul.f32 %v398_v51, %v388_v7 }
 0x167   : > { %v486_v61 = vpop.permute.xlu2 %485 }
 0x168   : > { %v488_v5 = vrot.slane %v486_v61, 4  ;;  %v495_v17 = vadd.f32 %v486_v61, %v402_v8 }
 0x16f   : > { %v596_v16 = vpop.permute.xlu2 %595 }
 0x170   : > { %v600_v25 = vperm.slane %v596_v16, %v952_v20 }
 0x178   : > { %v643_v33 = vpop.permute.xlu2 %642 }
 0x179   : > { %v484_v59 = vpop.permute.xlu1 %483 }
 0x17a   : > { %v487_v1 = vrot.slane %v484_v59, 4 }
 0x17c   : > { %v489_v45 = vsel %vm280_vm0, %v487_v1, %v488_v5 }
 0x17d   : > { %v491_v9 = vsel %vm490_vm11, %v484_v59, %v489_v45 }
 0x17e   : > { %v494_v18 = vadd.f32 %v491_v9, %v401_v13 }
 0x182   : > { %v681_v2 = vpop.permute.xlu2 %680 }
 0x189   : > { %v580_v11 = vpop.permute.xlu0 %579  ;;  %v582_v12 = vpop.permute.xlu1 %581 }
 0x18a   : > { %v583_v14 = vrot.slane %v580_v11, 4  ;;  %v584_v15 = vrot.slane %v582_v12, 4  ;;  %v591_v23 = vadd.f32 %v582_v12, %v495_v17 }
 0x18c   : > { %v585_v19 = vsel %vm280_vm0, %v583_v14, %v584_v15  ;;  %v603_v28 = vmul.f32 %v600_v25, %v591_v23 }
 0x18d   : > { %v587_v22 = vsel %vm586_vm12, %v580_v11, %v585_v19 }
 0x18e   : > { %v590_v24 = vadd.f32 %v587_v22, %v494_v18 }
 0x190   : > { %v602_v27 = vmul.f32 %v600_v25, %v590_v24 }
 0x191   : > { %v608_v26 = vpop.permute.xlu0 %607  ;;  %v622_v32 = vpop.permute.xlu1 %621 }
 0x192   : > { %v612_v29 = vperm.slane %v608_v26, %v952_v20 }
 0x194   : > { %v614_v30 = vadd.f32 %v612_v29, %v602_v27  ;;  %v615_v31 = vadd.f32 %v612_v29, %v603_v28 }
 0x196   : > { %v616_v34 = vmax.f32 %v614_v30, 0.0  ;;  %v617_v35 = vmax.f32 %v615_v31, 0.0 }
 0x198   : > { %v626_v36 = vperm.slane %v616_v34, 0  ;;  %v627_v37 = vperm.slane %v616_v34, 4  ;;  %v628_v38 = vperm.slane %v617_v35, 0  ;;  %v647_v39 = vperm.slane %v617_v35, 1 }
 0x199   : > { %v645_v40 = vperm.slane %v616_v34, 1  ;;  %v646_v41 = vperm.slane %v616_v34, 5  ;;  %v664_v42 = vperm.slane %v616_v34, 2  ;;  %v665_v43 = vperm.slane %v616_v34, 6  ;;  %v702_v16 = vpop.permute.xlu0 %701 }
 0x19a   : > { %v632_v44 = vperm.slane %v626_v36, 0  ;;  %v633_v46 = vperm.slane %v627_v37, 0  ;;  %v634_v47 = vperm.slane %v628_v38, 0  ;;  %v653_v6 = vperm.slane %v647_v39, 1  ;;  %v662_v55 = vpop.permute.xlu1 %661 }
 0x19b   : > { %v651_v48 = vperm.slane %v645_v40, 1  ;;  %v652_v20 = vperm.slane %v646_v41, 1  ;;  %v666_v49 = vperm.slane %v617_v35, 2  ;;  %v670_v50 = vperm.slane %v664_v42, 2 }
 0x19c   : > { %v635_v52 = vmul.f32 %v632_v44, %v622_v32  ;;  %v636_v53 = vmul.f32 %v633_v46, %v622_v32  ;;  %v637_v54 = vmul.f32 %v634_v47, %v622_v32  ;;  %v656_v3 = vmul.f32 %v653_v6, %v643_v33 }
 0x19d   : > { %v654_v10 = vmul.f32 %v651_v48, %v643_v33  ;;  %v655_v56 = vmul.f32 %v652_v20, %v643_v33  ;;  %v671_v57 = vperm.slane %v665_v43, 2  ;;  %v672_v58 = vperm.slane %v666_v49, 2 }
 0x19e   : > { %v659_v21 = vadd.f32 %v656_v3, %v637_v54  ;;  %v685_v59 = vperm.slane %v617_v35, 3  ;;  %v683_v60 = vperm.slane %v616_v34, 3  ;;  %v673_v63 = vmul.f32 %v670_v50, %v662_v55 }
 0x19f   : > { %v657_v61 = vadd.f32 %v654_v10, %v635_v52  ;;  %v658_v62 = vadd.f32 %v655_v56, %v636_v53  ;;  %v675_v1 = vmul.f32 %v672_v58, %v662_v55  ;;  %v674_v4 = vmul.f32 %v671_v57, %v662_v55 }
 0x1a0   : > { %v691_v5 = vperm.slane %v685_v59, 3  ;;  %v684_v0 = vperm.slane %v616_v34, 7  ;;  %v689_v7 = vperm.slane %v683_v60, 3 }
 0x1a1   : > { %v676_v45 = vadd.f32 %v673_v63, %v657_v61  ;;  %v678_v51 = vadd.f32 %v675_v1, %v659_v21  ;;  %v677_v8 = vadd.f32 %v674_v4, %v658_v62 }
 0x1a2   : > { %v690_v9 = vperm.slane %v684_v0, 3  ;;  %v692_v11 = vmul.f32 %v689_v7, %v681_v2  ;;  %v694_v12 = vmul.f32 %v691_v5, %v681_v2 }
 0x1a3   : > { %v711_v17 = vpop.permute.xlu1 %710 }
 0x1a4   : > { %v693_v13 = vmul.f32 %v690_v9, %v681_v2  ;;  %v695_v14 = vadd.f32 %v692_v11, %v676_v45  ;;  %v697_v15 = vadd.f32 %v694_v12, %v678_v51 }
 0x1a6   : > { %v696_v18 = vadd.f32 %v693_v13, %v677_v8  ;;  %v704_v19 = vmul.f32 %v702_v16, %v695_v14  ;;  %v706_v22 = vmul.f32 %v702_v16, %v697_v15 }
 0x1a8   : > { %v705_v23 = vmul.f32 %v702_v16, %v696_v18  ;;  %v713_v24 = vadd.f32 %v711_v17, %v704_v19  ;;  %v715_v25 = vadd.f32 %v711_v17, %v706_v22 }
 0x1aa   : > { %v714_v26 = vadd.f32 %v711_v17, %v705_v23  ;;  %v718_v27 = vmax.f32 %v715_v25, 0.0  ;;  %v716_v28 = vmax.f32 %v713_v24, 0.0 }
 0x1ac   : > { %726 = vrot.lane.b32.xlu1 %v718_v27, %s875_s27  ;;  %v717_v29 = vmax.f32 %v714_v26, 0.0  ;;  %722 = vrot.lane.b32.xlu2 %v716_v28, %s875_s27 }
 0x1ae   : > { %724 = vrot.lane.b32.xlu0 %v717_v29, %s875_s27 }
 0x206   : > { %v723_v31 = vpop.permute.xlu2 %722 }
 0x21e   : > { %v727_v30 = vpop.permute.xlu1 %726 }
 0x220   : > { %v725_v32 = vpop.permute.xlu0 %724 }
 0x221   : > { %v729_v33 = vsel %vm728_vm13, %v723_v31, %v725_v32  ;;  %v730_v34 = vsel %vm728_vm13, %v725_v32, %v727_v30 }
 0x222   : > { %733 = vst [vmem:[%s278_s8] sm:$0xff] %v729_v33 }
 0x223   : > { %734 = vst [vmem:[%s278_s8 + $0x8] sm:$0xff] %v730_v34 }
 0x224 PF: > { %s17_s24 = sadd.s32 1, %s855_s24  }
 0x225   : > { %p14_p4 = scmp.ge.s32.totalorder %s17_s24, 4  }
 0x227   :  { %16 = sbr.rel (!%p14_p4) target bundleno = 1 (0x1), region = 78 }

</bundles_post_ra>
